<compile_context>
chip_gen: v7x
topology: tpu7x:2x2x1
jax: 0.10.0
libtpu: 0.0.40
codegen_flags: <defaults>
</compile_context>

<pallas_src>
import functools

import numpy as np
import jax
import jax.numpy as jnp
from jax import lax
from jax.experimental import pallas as pl
from jax.experimental.pallas import tpu as pltpu

EPS = 1e-4          # BatchNorm eps
SLOPE = 0.01        # F.leaky_relu default negative_slope
KS = 5              # conv kernel size (pad = 2)


# ----------------------------------------------------------------------------
# small in-kernel helpers
# ----------------------------------------------------------------------------
def _shift_rows(x, sft):
    """y[r] = x[r + sft]; zero-filled at the ends of the row (sublane) axis."""
    if sft == 0:
        return x
    R, L = x.shape
    z = jnp.zeros((abs(sft), L), x.dtype)
    if sft > 0:
        return jnp.concatenate([x[sft:, :], z], axis=0)
    return jnp.concatenate([z, x[:R + sft, :]], axis=0)


def _fold_lanes(v, period):
    """Sum mod-`period` lane classes of a (1,128) row via a log-tree of lane
    rolls (XLU); result is the per-class total broadcast to every lane."""
    shift = 64
    while shift >= period:
        v = v + pltpu.roll(v, shift=shift, axis=1)
        shift //= 2
    return v


# ----------------------------------------------------------------------------
# the single fused Pallas kernel
# ----------------------------------------------------------------------------
def _encoder_kernel(xcat_ref, t1_ref, t2_ref, hp1_ref, hp2_ref, wfc_ref, out_ref):
    f32 = jnp.float32
    dot = lambda a, b: jnp.dot(a, b, preferred_element_type=f32)
    lrelu = lambda v: jnp.where(v > 0, v, SLOPE * v)
    N = out_ref.shape[0]

    # ---------------- stage 1: conv1 as ONE matmul --------------------------
    # xcat rows = (n, output row); K = 5 vertical taps x 32 padded cols.
    # t1 lanes = [even output cols | odd output cols], each block 128-aligned,
    # lane-in-block = we*8 + c_out.
    c1 = dot(xcat_ref[...], t1_ref[...])                    # (N*28, 256)

    # BN1 batch statistics entirely off the MXU (overlaps the pool matmuls).
    cnt1 = float(N * 28 * 28)
    s1 = jnp.sum(c1, axis=0, keepdims=True)                 # (1, 256)  XLU
    q1 = jnp.sum(c1 * c1, axis=0, keepdims=True)
    s1 = _fold_lanes(s1[:, :128] + s1[:, 128:], 8)          # per-channel sums,
    q1 = _fold_lanes(q1[:, :128] + q1[:, 128:], 8)          # broadcast on lanes
    mean1 = s1 * (1.0 / cnt1)
    inv1 = lax.rsqrt(q1 * (1.0 / cnt1) - mean1 * mean1 + EPS)

    # maxpool 2x2: W-pairs = parity blocks; H-pairs via 0/1 row selection.
    m1 = jnp.maximum(c1[:, :128], c1[:, 128:])              # (N*28, 128)
    p1 = jnp.maximum(dot(hp1_ref[0], m1), dot(hp1_ref[1], m1))   # (N*14, 128)
    # BN(affine=False => scale > 0) and leaky_relu are monotone increasing,
    # so normalize + activate after pooling is mathematically identical.
    p1 = lrelu((p1 - mean1) * inv1)

    # ---------------- stage 2: conv2 as ONE matmul --------------------------
    # Lane-concatenate the 5 vertical taps of p1 (sublane shifts + boundary
    # masks on the VPU/XLU; no MXU work), then a single K=640 matmul.
    rows = lax.broadcasted_iota(jnp.int32, (N * 14, 128), 0).astype(f32)
    h_in = rows - 14.0 * jnp.floor((rows + 0.5) * (1.0 / 14.0))   # row in sample
    blocks = []
    for dy in range(KS):
        sft = dy - 2
        blk = _shift_rows(p1, sft)
        if sft != 0:
            valid = jnp.logical_and(h_in + sft > -0.5, h_in + sft < 13.5)
            blk = jnp.where(valid, blk, 0.0)
        blocks.append(blk)
    p1cat = jnp.concatenate(blocks, axis=1)                 # (N*14, 640)
    y2 = dot(p1cat, t2_ref[...])                            # (N*14, 256)

    # BN2 statistics (channels are the mod-4 lane classes), off the MXU.
    cnt2 = float(N * 14 * 14)
    s2 = jnp.sum(y2, axis=0, keepdims=True)
    q2 = jnp.sum(y2 * y2, axis=0, keepdims=True)
    s2 = _fold_lanes(s2[:, :128] + s2[:, 128:], 4)
    q2 = _fold_lanes(q2[:, :128] + q2[:, 128:], 4)
    mean2 = s2 * (1.0 / cnt2)
    inv2 = lax.rsqrt(q2 * (1.0 / cnt2) - mean2 * mean2 + EPS)

    m2 = jnp.maximum(y2[:, :128], y2[:, 128:])              # (N*14, 128)
    p2 = jnp.maximum(dot(hp2_ref[0], m2), dot(hp2_ref[1], m2))   # (N*7, 128)
    p2 = lrelu((p2 - mean2) * inv2)

    # ---------------- fc1: ONE matmul, single full-block store ---------------
    # Move the 7 pooled rows of each sample onto lanes (lane = h*128 + we2*4+c);
    # the torch (C,H,W) flatten order is folded into wfc rows in the wrapper.
    samples = []
    for n in range(N):
        samples.append(jnp.concatenate(
            [p2[n * 7 + h:n * 7 + h + 1, :] for h in range(7)], axis=1))
    p2cat = jnp.concatenate(samples, axis=0)                # (N, 896)
    out_ref[...] = dot(p2cat, wfc_ref[...]).astype(out_ref.dtype)


# ----------------------------------------------------------------------------
# trace-time constant construction (tiny; weight-independent parts in numpy)
# ----------------------------------------------------------------------------
@functools.lru_cache(maxsize=None)
def _static_matrices(N):
    # conv1 Toeplitz placement: padded col j -> (parity, we, dx)
    p1m = np.zeros((32, 2, 14, KS), np.float32)
    for par in range(2):
        for we in range(14):
            for dx in range(KS):
                p1m[2 * we + par + dx, par, we, dx] = 1.0

    # conv2 Toeplitz placement: input col we -> (parity, we2, dx)
    p2m = np.zeros((14, 2, 7, KS), np.float32)
    for par in range(2):
        for we2 in range(7):
            for dx in range(KS):
                we = 2 * we2 + par + dx - 2
                if 0 <= we < 14:
                    p2m[we, par, we2, dx] = 1.0

    # 2x2 max-pool row selectors (even / odd H rows).
    # TODO(synk): O(N^2) memory; switch to per-sample selection + batch-parallel
    # grid before scaling N (v7x 64 MiB VMEM concern).
    hp1 = np.zeros((2, N * 14, N * 28), np.float32)
    hp2 = np.zeros((2, N * 7, N * 14), np.float32)
    for n in range(N):
        for hp in range(14):
            hp1[0, n * 14 + hp, n * 28 + 2 * hp] = 1.0
            hp1[1, n * 14 + hp, n * 28 + 2 * hp + 1] = 1.0
        for hp in range(7):
            hp2[0, n * 7 + hp, n * 14 + 2 * hp] = 1.0
            hp2[1, n * 7 + hp, n * 14 + 2 * hp + 1] = 1.0

    return dict(p1m=p1m, p2m=p2m, hp1=hp1, hp2=hp2)


def encoder_forward(x_nchw, params):
    """x_nchw: (N, 1, 28, 28) float32 -> (N, z_dim) float32."""
    w1, w2, wfc = params["conv1"], params["conv2"], params["fc1"]
    N = x_nchw.shape[0]
    assert x_nchw.shape[1:] == (1, 28, 28)
    z_dim = wfc.shape[0]
    c = _static_matrices(N)
    f32 = jnp.float32

    # im2col of the 5 vertical taps along K (rows = (n, output row): no junk
    # rows, so no BN mask is needed inside the kernel).
    xpad = jnp.pad(x_nchw[:, 0], ((0, 0), (2, 2), (2, 2)))            # (N,32,32)
    xcat = jnp.concatenate([xpad[:, dy:dy + 28, :] for dy in range(KS)],
                           axis=-1).reshape(N * 28, KS * 32)          # (N*28,160)

    # conv1 Toeplitz: all 5 taps stacked along K, even/odd blocks 128-aligned.
    t1 = jnp.einsum("jpwx,cdx->djpwc", jnp.asarray(c["p1m"]), w1[:, 0])
    t1 = t1.reshape(KS, 32, 2, 112)
    t1 = jnp.concatenate([t1, jnp.zeros((KS, 32, 2, 16), f32)], axis=-1)
    t1 = t1.reshape(KS * 32, 256)                                     # (160,256)

    # conv2 Toeplitz: 5 vertical taps along K (128-aligned row blocks), even/odd
    # output columns in 128-aligned lane blocks; zero rows kill p1's junk lanes.
    t2 = jnp.einsum("wpvx,oidx->dwipvo", jnp.asarray(c["p2m"]), w2)
    t2 = t2.reshape(KS, 112, 2, 28)
    t2 = jnp.concatenate([t2, jnp.zeros((KS, 16, 2, 28), f32)], axis=1)
    t2 = jnp.concatenate([t2, jnp.zeros((KS, 128, 2, 100), f32)], axis=-1)
    t2 = t2.reshape(KS * 128, 256)                                    # (640,256)

    # fc weight with the torch (C,H,W) flatten order + lane padding folded in.
    wfc_r = jnp.transpose(wfc.reshape(z_dim, 4, 7, 7), (2, 3, 1, 0))  # (h,w,c,z)
    wfc_r = wfc_r.reshape(7, 28, z_dim)
    wfc_r = jnp.concatenate([wfc_r, jnp.zeros((7, 100, z_dim), f32)], axis=1)
    wfc_r = wfc_r.reshape(7 * 128, z_dim)                             # (896, z)

    operands = (xcat, t1, t2, jnp.asarray(c["hp1"]), jnp.asarray(c["hp2"]), wfc_r)

    vmem = pl.BlockSpec(memory_space=pltpu.MemorySpace.VMEM)
    return pl.pallas_call(
        _encoder_kernel,
        out_shape=jax.ShapeDtypeStruct((N, z_dim), jnp.float32),
        in_specs=[vmem] * len(operands),
        out_specs=vmem,
        compiler_params=pltpu.CompilerParams(
            vmem_limit_bytes=8 * 1024 * 1024),
    )(*operands)


# ----------------------------------------------------------------------------
# pure-JAX reference (independent path) for a sanity check
# ----------------------------------------------------------------------------
def ref_forward(x, params):
    w1, w2, wfc = params["conv1"], params["conv2"], params["fc1"]
    dn = ("NCHW", "OIHW", "NCHW")

    def bn(y):
        m = y.mean(axis=(0, 2, 3), keepdims=True)
        v = ((y - m) ** 2).mean(axis=(0, 2, 3), keepdims=True)
        return (y - m) / jnp.sqrt(v + EPS)

    def lrelu(y):
        return jnp.where(y > 0, y, SLOPE * y)

    def pool(y):
        n, ch, hh, ww = y.shape
        return y.reshape(n, ch, hh // 2, 2, ww // 2, 2).max(axis=(3, 5))

    y = lax.conv_general_dilated(x, w1, (1, 1), ((2, 2), (2, 2)),
                                 dimension_numbers=dn)
    y = pool(lrelu(bn(y)))
    y = lax.conv_general_dilated(y, w2, (1, 1), ((2, 2), (2, 2)),
                                 dimension_numbers=dn)
    y = pool(lrelu(bn(y)))
    return y.reshape(y.shape[0], -1) @ wfc.T


# ----------------------------------------------------------------------------
if __name__ == "__main__":
    key = jax.random.PRNGKey(0)
    kx, k1, k2, k3 = jax.random.split(key, 4)

    N, z_dim = 2, 32
    x = jax.random.normal(kx, (N, 1, 28, 28), dtype=jnp.float32)

    # deterministic synthetic parameters (torch-like uniform(-1/sqrt(fan_in), .))
    params = {
        "conv1": jax.random.uniform(k1, (8, 1, 5, 5), jnp.float32, -1.0, 1.0)
                 / np.sqrt(1 * 25),
        "conv2": jax.random.uniform(k2, (4, 8, 5, 5), jnp.float32, -1.0, 1.0)
                 / np.sqrt(8 * 25),
        "fc1":   jax.random.uniform(k3, (z_dim, 4 * 7 * 7), jnp.float32, -1.0, 1.0)
                 / np.sqrt(196),
    }

    fwd = jax.jit(encoder_forward)
    out = jax.block_until_ready(fwd(x, params))
    assert out.shape == (N, z_dim) and out.dtype == jnp.float32

    ref = jax.block_until_ready(ref_forward(x, params))
    assert np.allclose(np.asarray(out), np.asarray(ref), rtol=1e-3, atol=1e-3), (
        "Pallas output diverges from reference"
    )

    print("KERNEL_OK")
</pallas_src>

<mosaic_0001>
module attributes {stable_mosaic.version = 11 : i64} {
  func.func @_encoder_kernel(%arg0: memref<56x160xf32, #tpu.memory_space<vmem>>, %arg1: memref<160x256xf32, #tpu.memory_space<vmem>>, %arg2: memref<640x256xf32, #tpu.memory_space<vmem>>, %arg3: memref<2x28x56xf32, #tpu.memory_space<vmem>>, %arg4: memref<2x14x28xf32, #tpu.memory_space<vmem>>, %arg5: memref<896x32xf32, #tpu.memory_space<vmem>>, %arg6: memref<2x32xf32, #tpu.memory_space<vmem>>) attributes {dimension_semantics = [], scalar_prefetch = 0 : i64, scratch_operands = 0 : i64, tpu.core_type = #tpu.core_type<tc>} {
    %c0 = arith.constant 0 : index
    %c0_0 = arith.constant 0 : index
    %0 = vector.load %arg0[%c0, %c0_0] : memref<56x160xf32, #tpu.memory_space<vmem>>, vector<56x160xf32>
    %c0_1 = arith.constant 0 : index
    %c0_2 = arith.constant 0 : index
    %1 = vector.load %arg1[%c0_1, %c0_2] : memref<160x256xf32, #tpu.memory_space<vmem>>, vector<160x256xf32>
    %cst = arith.constant dense<0.000000e+00> : vector<56x256xf32>
    %2 = tpu.matmul %0, %1, %cst {dimension_numbers = #tpu.dot_dimension_numbers<[1], [0], [0], [1], [0, 0, 1, 1], [], []>} : vector<56x160xf32>, vector<160x256xf32>, vector<56x256xf32> -> vector<56x256xf32>
    %cst_3 = arith.constant dense<0.000000e+00> : vector<256xf32>
    %3 = vector.multi_reduction <add>, %2, %cst_3 [0] : vector<56x256xf32> to vector<256xf32>
    %4 = vector.shape_cast %3 : vector<256xf32> to vector<1x256xf32>
    %5 = arith.mulf %2, %2 : vector<56x256xf32>
    %cst_4 = arith.constant dense<0.000000e+00> : vector<256xf32>
    %6 = vector.multi_reduction <add>, %5, %cst_4 [0] : vector<56x256xf32> to vector<256xf32>
    %7 = vector.shape_cast %6 : vector<256xf32> to vector<1x256xf32>
    %8 = vector.extract_strided_slice %4 {offsets = [0, 0], sizes = [1, 128], strides = [1, 1]} : vector<1x256xf32> to vector<1x128xf32>
    %9 = vector.extract_strided_slice %4 {offsets = [0, 128], sizes = [1, 128], strides = [1, 1]} : vector<1x256xf32> to vector<1x128xf32>
    %10 = arith.addf %8, %9 : vector<1x128xf32>
    %c64_i32 = arith.constant 64 : i32
    %11 = tpu.dynamic_rotate %10 by %c64_i32 dim 1 : vector<1x128xf32>, i32 -> vector<1x128xf32>
    %12 = arith.addf %10, %11 : vector<1x128xf32>
    %c32_i32 = arith.constant 32 : i32
    %13 = tpu.dynamic_rotate %12 by %c32_i32 dim 1 : vector<1x128xf32>, i32 -> vector<1x128xf32>
    %14 = arith.addf %12, %13 : vector<1x128xf32>
    %c16_i32 = arith.constant 16 : i32
    %15 = tpu.dynamic_rotate %14 by %c16_i32 dim 1 : vector<1x128xf32>, i32 -> vector<1x128xf32>
    %16 = arith.addf %14, %15 : vector<1x128xf32>
    %c8_i32 = arith.constant 8 : i32
    %17 = tpu.dynamic_rotate %16 by %c8_i32 dim 1 : vector<1x128xf32>, i32 -> vector<1x128xf32>
    %18 = arith.addf %16, %17 : vector<1x128xf32>
    %19 = vector.extract_strided_slice %7 {offsets = [0, 0], sizes = [1, 128], strides = [1, 1]} : vector<1x256xf32> to vector<1x128xf32>
    %20 = vector.extract_strided_slice %7 {offsets = [0, 128], sizes = [1, 128], strides = [1, 1]} : vector<1x256xf32> to vector<1x128xf32>
    %21 = arith.addf %19, %20 : vector<1x128xf32>
    %c64_i32_5 = arith.constant 64 : i32
    %22 = tpu.dynamic_rotate %21 by %c64_i32_5 dim 1 : vector<1x128xf32>, i32 -> vector<1x128xf32>
    %23 = arith.addf %21, %22 : vector<1x128xf32>
    %c32_i32_6 = arith.constant 32 : i32
    %24 = tpu.dynamic_rotate %23 by %c32_i32_6 dim 1 : vector<1x128xf32>, i32 -> vector<1x128xf32>
    %25 = arith.addf %23, %24 : vector<1x128xf32>
    %c16_i32_7 = arith.constant 16 : i32
    %26 = tpu.dynamic_rotate %25 by %c16_i32_7 dim 1 : vector<1x128xf32>, i32 -> vector<1x128xf32>
    %27 = arith.addf %25, %26 : vector<1x128xf32>
    %c8_i32_8 = arith.constant 8 : i32
    %28 = tpu.dynamic_rotate %27 by %c8_i32_8 dim 1 : vector<1x128xf32>, i32 -> vector<1x128xf32>
    %29 = arith.addf %27, %28 : vector<1x128xf32>
    %cst_9 = arith.constant 6.37755089E-4 : f32
    %30 = vector.broadcast %cst_9 : f32 to vector<1x128xf32>
    %31 = arith.mulf %18, %30 : vector<1x128xf32>
    %cst_10 = arith.constant 6.37755089E-4 : f32
    %32 = vector.broadcast %cst_10 : f32 to vector<1x128xf32>
    %33 = arith.mulf %29, %32 : vector<1x128xf32>
    %34 = arith.mulf %31, %31 : vector<1x128xf32>
    %35 = arith.subf %33, %34 : vector<1x128xf32>
    %cst_11 = arith.constant 9.99999974E-5 : f32
    %36 = vector.broadcast %cst_11 : f32 to vector<1x128xf32>
    %37 = arith.addf %35, %36 : vector<1x128xf32>
    %38 = math.rsqrt %37 : vector<1x128xf32>
    %39 = vector.extract_strided_slice %2 {offsets = [0, 0], sizes = [56, 128], strides = [1, 1]} : vector<56x256xf32> to vector<56x128xf32>
    %40 = vector.extract_strided_slice %2 {offsets = [0, 128], sizes = [56, 128], strides = [1, 1]} : vector<56x256xf32> to vector<56x128xf32>
    %41 = arith.maximumf %39, %40 : vector<56x128xf32>
    %c0_12 = arith.constant 0 : index
    %c0_13 = arith.constant 0 : index
    %c0_14 = arith.constant 0 : index
    %42 = vector.load %arg3[%c0_12, %c0_13, %c0_14] : memref<2x28x56xf32, #tpu.memory_space<vmem>>, vector<1x28x56xf32>
    %43 = vector.shape_cast %42 : vector<1x28x56xf32> to vector<28x56xf32>
    %cst_15 = arith.constant dense<0.000000e+00> : vector<28x128xf32>
    %44 = tpu.matmul %43, %41, %cst_15 {dimension_numbers = #tpu.dot_dimension_numbers<[1], [0], [0], [1], [0, 0, 1, 1], [], []>} : vector<28x56xf32>, vector<56x128xf32>, vector<28x128xf32> -> vector<28x128xf32>
    %c1 = arith.constant 1 : index
    %c0_16 = arith.constant 0 : index
    %c0_17 = arith.constant 0 : index
    %45 = vector.load %arg3[%c1, %c0_16, %c0_17] : memref<2x28x56xf32, #tpu.memory_space<vmem>>, vector<1x28x56xf32>
    %46 = vector.shape_cast %45 : vector<1x28x56xf32> to vector<28x56xf32>
    %cst_18 = arith.constant dense<0.000000e+00> : vector<28x128xf32>
    %47 = tpu.matmul %46, %41, %cst_18 {dimension_numbers = #tpu.dot_dimension_numbers<[1], [0], [0], [1], [0, 0, 1, 1], [], []>} : vector<28x56xf32>, vector<56x128xf32>, vector<28x128xf32> -> vector<28x128xf32>
    %48 = arith.maximumf %44, %47 : vector<28x128xf32>
    %49 = vector.broadcast %31 : vector<1x128xf32> to vector<28x128xf32>
    %50 = arith.subf %48, %49 : vector<28x128xf32>
    %51 = vector.broadcast %38 : vector<1x128xf32> to vector<28x128xf32>
    %52 = arith.mulf %50, %51 : vector<28x128xf32>
    %cst_19 = arith.constant 0.000000e+00 : f32
    %53 = vector.broadcast %cst_19 : f32 to vector<28x128xf32>
    %54 = arith.cmpf ogt, %52, %53 : vector<28x128xf32>
    %cst_20 = arith.constant 0.00999999977 : f32
    %55 = vector.broadcast %cst_20 : f32 to vector<28x128xf32>
    %56 = arith.mulf %55, %52 : vector<28x128xf32>
    %57 = arith.select %54, %52, %56 : vector<28x128xi1>, vector<28x128xf32>
    %58 = tpu.iota {dimensions = array<i32: 0>} : vector<28x128xi32>
    %59 = arith.sitofp %58 : vector<28x128xi32> to vector<28x128xf32>
    %cst_21 = arith.constant 5.000000e-01 : f32
    %60 = vector.broadcast %cst_21 : f32 to vector<28x128xf32>
    %61 = arith.addf %59, %60 : vector<28x128xf32>
    %cst_22 = arith.constant 0.0714285746 : f32
    %62 = vector.broadcast %cst_22 : f32 to vector<28x128xf32>
    %63 = arith.mulf %61, %62 : vector<28x128xf32>
    %64 = math.floor %63 : vector<28x128xf32>
    %cst_23 = arith.constant 1.400000e+01 : f32
    %65 = vector.broadcast %cst_23 : f32 to vector<28x128xf32>
    %66 = arith.mulf %65, %64 : vector<28x128xf32>
    %67 = arith.subf %59, %66 : vector<28x128xf32>
    %cst_24 = arith.constant 0.000000e+00 : f32
    %68 = vector.broadcast %cst_24 : f32 to vector<2x128xf32>
    %69 = vector.extract_strided_slice %57 {offsets = [0, 0], sizes = [26, 128], strides = [1, 1]} : vector<28x128xf32> to vector<26x128xf32>
    %70 = tpu.concatenate %68, %69 in 0 : vector<2x128xf32>, vector<26x128xf32> -> vector<28x128xf32>
    %cst_25 = arith.constant -2.000000e+00 : f32
    %71 = vector.broadcast %cst_25 : f32 to vector<28x128xf32>
    %72 = arith.addf %67, %71 : vector<28x128xf32>
    %cst_26 = arith.constant -5.000000e-01 : f32
    %73 = vector.broadcast %cst_26 : f32 to vector<28x128xf32>
    %74 = arith.cmpf ogt, %72, %73 : vector<28x128xf32>
    %cst_27 = arith.constant -2.000000e+00 : f32
    %75 = vector.broadcast %cst_27 : f32 to vector<28x128xf32>
    %76 = arith.addf %67, %75 : vector<28x128xf32>
    %cst_28 = arith.constant 1.350000e+01 : f32
    %77 = vector.broadcast %cst_28 : f32 to vector<28x128xf32>
    %78 = arith.cmpf olt, %76, %77 : vector<28x128xf32>
    %79 = arith.andi %74, %78 : vector<28x128xi1>
    %cst_29 = arith.constant 0.000000e+00 : f32
    %80 = vector.broadcast %cst_29 : f32 to vector<28x128xf32>
    %81 = arith.select %79, %70, %80 : vector<28x128xi1>, vector<28x128xf32>
    %cst_30 = arith.constant 0.000000e+00 : f32
    %82 = vector.broadcast %cst_30 : f32 to vector<1x128xf32>
    %83 = vector.extract_strided_slice %57 {offsets = [0, 0], sizes = [27, 128], strides = [1, 1]} : vector<28x128xf32> to vector<27x128xf32>
    %84 = tpu.concatenate %82, %83 in 0 : vector<1x128xf32>, vector<27x128xf32> -> vector<28x128xf32>
    %cst_31 = arith.constant -1.000000e+00 : f32
    %85 = vector.broadcast %cst_31 : f32 to vector<28x128xf32>
    %86 = arith.addf %67, %85 : vector<28x128xf32>
    %cst_32 = arith.constant -5.000000e-01 : f32
    %87 = vector.broadcast %cst_32 : f32 to vector<28x128xf32>
    %88 = arith.cmpf ogt, %86, %87 : vector<28x128xf32>
    %cst_33 = arith.constant -1.000000e+00 : f32
    %89 = vector.broadcast %cst_33 : f32 to vector<28x128xf32>
    %90 = arith.addf %67, %89 : vector<28x128xf32>
    %cst_34 = arith.constant 1.350000e+01 : f32
    %91 = vector.broadcast %cst_34 : f32 to vector<28x128xf32>
    %92 = arith.cmpf olt, %90, %91 : vector<28x128xf32>
    %93 = arith.andi %88, %92 : vector<28x128xi1>
    %cst_35 = arith.constant 0.000000e+00 : f32
    %94 = vector.broadcast %cst_35 : f32 to vector<28x128xf32>
    %95 = arith.select %93, %84, %94 : vector<28x128xi1>, vector<28x128xf32>
    %cst_36 = arith.constant 0.000000e+00 : f32
    %96 = vector.broadcast %cst_36 : f32 to vector<1x128xf32>
    %97 = vector.extract_strided_slice %57 {offsets = [1, 0], sizes = [27, 128], strides = [1, 1]} : vector<28x128xf32> to vector<27x128xf32>
    %98 = tpu.concatenate %97, %96 in 0 : vector<27x128xf32>, vector<1x128xf32> -> vector<28x128xf32>
    %cst_37 = arith.constant 1.000000e+00 : f32
    %99 = vector.broadcast %cst_37 : f32 to vector<28x128xf32>
    %100 = arith.addf %67, %99 : vector<28x128xf32>
    %cst_38 = arith.constant -5.000000e-01 : f32
    %101 = vector.broadcast %cst_38 : f32 to vector<28x128xf32>
    %102 = arith.cmpf ogt, %100, %101 : vector<28x128xf32>
    %cst_39 = arith.constant 1.000000e+00 : f32
    %103 = vector.broadcast %cst_39 : f32 to vector<28x128xf32>
    %104 = arith.addf %67, %103 : vector<28x128xf32>
    %cst_40 = arith.constant 1.350000e+01 : f32
    %105 = vector.broadcast %cst_40 : f32 to vector<28x128xf32>
    %106 = arith.cmpf olt, %104, %105 : vector<28x128xf32>
    %107 = arith.andi %102, %106 : vector<28x128xi1>
    %cst_41 = arith.constant 0.000000e+00 : f32
    %108 = vector.broadcast %cst_41 : f32 to vector<28x128xf32>
    %109 = arith.select %107, %98, %108 : vector<28x128xi1>, vector<28x128xf32>
    %cst_42 = arith.constant 0.000000e+00 : f32
    %110 = vector.broadcast %cst_42 : f32 to vector<2x128xf32>
    %111 = vector.extract_strided_slice %57 {offsets = [2, 0], sizes = [26, 128], strides = [1, 1]} : vector<28x128xf32> to vector<26x128xf32>
    %112 = tpu.concatenate %111, %110 in 0 : vector<26x128xf32>, vector<2x128xf32> -> vector<28x128xf32>
    %cst_43 = arith.constant 2.000000e+00 : f32
    %113 = vector.broadcast %cst_43 : f32 to vector<28x128xf32>
    %114 = arith.addf %67, %113 : vector<28x128xf32>
    %cst_44 = arith.constant -5.000000e-01 : f32
    %115 = vector.broadcast %cst_44 : f32 to vector<28x128xf32>
    %116 = arith.cmpf ogt, %114, %115 : vector<28x128xf32>
    %cst_45 = arith.constant 2.000000e+00 : f32
    %117 = vector.broadcast %cst_45 : f32 to vector<28x128xf32>
    %118 = arith.addf %67, %117 : vector<28x128xf32>
    %cst_46 = arith.constant 1.350000e+01 : f32
    %119 = vector.broadcast %cst_46 : f32 to vector<28x128xf32>
    %120 = arith.cmpf olt, %118, %119 : vector<28x128xf32>
    %121 = arith.andi %116, %120 : vector<28x128xi1>
    %cst_47 = arith.constant 0.000000e+00 : f32
    %122 = vector.broadcast %cst_47 : f32 to vector<28x128xf32>
    %123 = arith.select %121, %112, %122 : vector<28x128xi1>, vector<28x128xf32>
    %124 = tpu.concatenate %81, %95, %57, %109, %123 in 1 : vector<28x128xf32>, vector<28x128xf32>, vector<28x128xf32>, vector<28x128xf32>, vector<28x128xf32> -> vector<28x640xf32>
    %c0_48 = arith.constant 0 : index
    %c0_49 = arith.constant 0 : index
    %125 = vector.load %arg2[%c0_48, %c0_49] : memref<640x256xf32, #tpu.memory_space<vmem>>, vector<640x256xf32>
    %cst_50 = arith.constant dense<0.000000e+00> : vector<28x256xf32>
    %126 = tpu.matmul %124, %125, %cst_50 {dimension_numbers = #tpu.dot_dimension_numbers<[1], [0], [0], [1], [0, 0, 1, 1], [], []>} : vector<28x640xf32>, vector<640x256xf32>, vector<28x256xf32> -> vector<28x256xf32>
    %cst_51 = arith.constant dense<0.000000e+00> : vector<256xf32>
    %127 = vector.multi_reduction <add>, %126, %cst_51 [0] : vector<28x256xf32> to vector<256xf32>
    %128 = vector.shape_cast %127 : vector<256xf32> to vector<1x256xf32>
    %129 = arith.mulf %126, %126 : vector<28x256xf32>
    %cst_52 = arith.constant dense<0.000000e+00> : vector<256xf32>
    %130 = vector.multi_reduction <add>, %129, %cst_52 [0] : vector<28x256xf32> to vector<256xf32>
    %131 = vector.shape_cast %130 : vector<256xf32> to vector<1x256xf32>
    %132 = vector.extract_strided_slice %128 {offsets = [0, 0], sizes = [1, 128], strides = [1, 1]} : vector<1x256xf32> to vector<1x128xf32>
    %133 = vector.extract_strided_slice %128 {offsets = [0, 128], sizes = [1, 128], strides = [1, 1]} : vector<1x256xf32> to vector<1x128xf32>
    %134 = arith.addf %132, %133 : vector<1x128xf32>
    %c64_i32_53 = arith.constant 64 : i32
    %135 = tpu.dynamic_rotate %134 by %c64_i32_53 dim 1 : vector<1x128xf32>, i32 -> vector<1x128xf32>
    %136 = arith.addf %134, %135 : vector<1x128xf32>
    %c32_i32_54 = arith.constant 32 : i32
    %137 = tpu.dynamic_rotate %136 by %c32_i32_54 dim 1 : vector<1x128xf32>, i32 -> vector<1x128xf32>
    %138 = arith.addf %136, %137 : vector<1x128xf32>
    %c16_i32_55 = arith.constant 16 : i32
    %139 = tpu.dynamic_rotate %138 by %c16_i32_55 dim 1 : vector<1x128xf32>, i32 -> vector<1x128xf32>
    %140 = arith.addf %138, %139 : vector<1x128xf32>
    %c8_i32_56 = arith.constant 8 : i32
    %141 = tpu.dynamic_rotate %140 by %c8_i32_56 dim 1 : vector<1x128xf32>, i32 -> vector<1x128xf32>
    %142 = arith.addf %140, %141 : vector<1x128xf32>
    %c4_i32 = arith.constant 4 : i32
    %143 = tpu.dynamic_rotate %142 by %c4_i32 dim 1 : vector<1x128xf32>, i32 -> vector<1x128xf32>
    %144 = arith.addf %142, %143 : vector<1x128xf32>
    %145 = vector.extract_strided_slice %131 {offsets = [0, 0], sizes = [1, 128], strides = [1, 1]} : vector<1x256xf32> to vector<1x128xf32>
    %146 = vector.extract_strided_slice %131 {offsets = [0, 128], sizes = [1, 128], strides = [1, 1]} : vector<1x256xf32> to vector<1x128xf32>
    %147 = arith.addf %145, %146 : vector<1x128xf32>
    %c64_i32_57 = arith.constant 64 : i32
    %148 = tpu.dynamic_rotate %147 by %c64_i32_57 dim 1 : vector<1x128xf32>, i32 -> vector<1x128xf32>
    %149 = arith.addf %147, %148 : vector<1x128xf32>
    %c32_i32_58 = arith.constant 32 : i32
    %150 = tpu.dynamic_rotate %149 by %c32_i32_58 dim 1 : vector<1x128xf32>, i32 -> vector<1x128xf32>
    %151 = arith.addf %149, %150 : vector<1x128xf32>
    %c16_i32_59 = arith.constant 16 : i32
    %152 = tpu.dynamic_rotate %151 by %c16_i32_59 dim 1 : vector<1x128xf32>, i32 -> vector<1x128xf32>
    %153 = arith.addf %151, %152 : vector<1x128xf32>
    %c8_i32_60 = arith.constant 8 : i32
    %154 = tpu.dynamic_rotate %153 by %c8_i32_60 dim 1 : vector<1x128xf32>, i32 -> vector<1x128xf32>
    %155 = arith.addf %153, %154 : vector<1x128xf32>
    %c4_i32_61 = arith.constant 4 : i32
    %156 = tpu.dynamic_rotate %155 by %c4_i32_61 dim 1 : vector<1x128xf32>, i32 -> vector<1x128xf32>
    %157 = arith.addf %155, %156 : vector<1x128xf32>
    %cst_62 = arith.constant 0.00255102036 : f32
    %158 = vector.broadcast %cst_62 : f32 to vector<1x128xf32>
    %159 = arith.mulf %144, %158 : vector<1x128xf32>
    %cst_63 = arith.constant 0.00255102036 : f32
    %160 = vector.broadcast %cst_63 : f32 to vector<1x128xf32>
    %161 = arith.mulf %157, %160 : vector<1x128xf32>
    %162 = arith.mulf %159, %159 : vector<1x128xf32>
    %163 = arith.subf %161, %162 : vector<1x128xf32>
    %cst_64 = arith.constant 9.99999974E-5 : f32
    %164 = vector.broadcast %cst_64 : f32 to vector<1x128xf32>
    %165 = arith.addf %163, %164 : vector<1x128xf32>
    %166 = math.rsqrt %165 : vector<1x128xf32>
    %167 = vector.extract_strided_slice %126 {offsets = [0, 0], sizes = [28, 128], strides = [1, 1]} : vector<28x256xf32> to vector<28x128xf32>
    %168 = vector.extract_strided_slice %126 {offsets = [0, 128], sizes = [28, 128], strides = [1, 1]} : vector<28x256xf32> to vector<28x128xf32>
    %169 = arith.maximumf %167, %168 : vector<28x128xf32>
    %c0_65 = arith.constant 0 : index
    %c0_66 = arith.constant 0 : index
    %c0_67 = arith.constant 0 : index
    %170 = vector.load %arg4[%c0_65, %c0_66, %c0_67] : memref<2x14x28xf32, #tpu.memory_space<vmem>>, vector<1x14x28xf32>
    %171 = vector.shape_cast %170 : vector<1x14x28xf32> to vector<14x28xf32>
    %cst_68 = arith.constant dense<0.000000e+00> : vector<14x128xf32>
    %172 = tpu.matmul %171, %169, %cst_68 {dimension_numbers = #tpu.dot_dimension_numbers<[1], [0], [0], [1], [0, 0, 1, 1], [], []>} : vector<14x28xf32>, vector<28x128xf32>, vector<14x128xf32> -> vector<14x128xf32>
    %c1_69 = arith.constant 1 : index
    %c0_70 = arith.constant 0 : index
    %c0_71 = arith.constant 0 : index
    %173 = vector.load %arg4[%c1_69, %c0_70, %c0_71] : memref<2x14x28xf32, #tpu.memory_space<vmem>>, vector<1x14x28xf32>
    %174 = vector.shape_cast %173 : vector<1x14x28xf32> to vector<14x28xf32>
    %cst_72 = arith.constant dense<0.000000e+00> : vector<14x128xf32>
    %175 = tpu.matmul %174, %169, %cst_72 {dimension_numbers = #tpu.dot_dimension_numbers<[1], [0], [0], [1], [0, 0, 1, 1], [], []>} : vector<14x28xf32>, vector<28x128xf32>, vector<14x128xf32> -> vector<14x128xf32>
    %176 = arith.maximumf %172, %175 : vector<14x128xf32>
    %177 = vector.broadcast %159 : vector<1x128xf32> to vector<14x128xf32>
    %178 = arith.subf %176, %177 : vector<14x128xf32>
    %179 = vector.broadcast %166 : vector<1x128xf32> to vector<14x128xf32>
    %180 = arith.mulf %178, %179 : vector<14x128xf32>
    %cst_73 = arith.constant 0.000000e+00 : f32
    %181 = vector.broadcast %cst_73 : f32 to vector<14x128xf32>
    %182 = arith.cmpf ogt, %180, %181 : vector<14x128xf32>
    %cst_74 = arith.constant 0.00999999977 : f32
    %183 = vector.broadcast %cst_74 : f32 to vector<14x128xf32>
    %184 = arith.mulf %183, %180 : vector<14x128xf32>
    %185 = arith.select %182, %180, %184 : vector<14x128xi1>, vector<14x128xf32>
    %186 = vector.extract_strided_slice %185 {offsets = [0, 0], sizes = [1, 128], strides = [1, 1]} : vector<14x128xf32> to vector<1x128xf32>
    %187 = vector.extract_strided_slice %185 {offsets = [1, 0], sizes = [1, 128], strides = [1, 1]} : vector<14x128xf32> to vector<1x128xf32>
    %188 = vector.extract_strided_slice %185 {offsets = [2, 0], sizes = [1, 128], strides = [1, 1]} : vector<14x128xf32> to vector<1x128xf32>
    %189 = vector.extract_strided_slice %185 {offsets = [3, 0], sizes = [1, 128], strides = [1, 1]} : vector<14x128xf32> to vector<1x128xf32>
    %190 = vector.extract_strided_slice %185 {offsets = [4, 0], sizes = [1, 128], strides = [1, 1]} : vector<14x128xf32> to vector<1x128xf32>
    %191 = vector.extract_strided_slice %185 {offsets = [5, 0], sizes = [1, 128], strides = [1, 1]} : vector<14x128xf32> to vector<1x128xf32>
    %192 = vector.extract_strided_slice %185 {offsets = [6, 0], sizes = [1, 128], strides = [1, 1]} : vector<14x128xf32> to vector<1x128xf32>
    %193 = tpu.concatenate %186, %187, %188, %189, %190, %191, %192 in 1 : vector<1x128xf32>, vector<1x128xf32>, vector<1x128xf32>, vector<1x128xf32>, vector<1x128xf32>, vector<1x128xf32>, vector<1x128xf32> -> vector<1x896xf32>
    %194 = vector.extract_strided_slice %185 {offsets = [7, 0], sizes = [1, 128], strides = [1, 1]} : vector<14x128xf32> to vector<1x128xf32>
    %195 = vector.extract_strided_slice %185 {offsets = [8, 0], sizes = [1, 128], strides = [1, 1]} : vector<14x128xf32> to vector<1x128xf32>
    %196 = vector.extract_strided_slice %185 {offsets = [9, 0], sizes = [1, 128], strides = [1, 1]} : vector<14x128xf32> to vector<1x128xf32>
    %197 = vector.extract_strided_slice %185 {offsets = [10, 0], sizes = [1, 128], strides = [1, 1]} : vector<14x128xf32> to vector<1x128xf32>
    %198 = vector.extract_strided_slice %185 {offsets = [11, 0], sizes = [1, 128], strides = [1, 1]} : vector<14x128xf32> to vector<1x128xf32>
    %199 = vector.extract_strided_slice %185 {offsets = [12, 0], sizes = [1, 128], strides = [1, 1]} : vector<14x128xf32> to vector<1x128xf32>
    %200 = vector.extract_strided_slice %185 {offsets = [13, 0], sizes = [1, 128], strides = [1, 1]} : vector<14x128xf32> to vector<1x128xf32>
    %201 = tpu.concatenate %194, %195, %196, %197, %198, %199, %200 in 1 : vector<1x128xf32>, vector<1x128xf32>, vector<1x128xf32>, vector<1x128xf32>, vector<1x128xf32>, vector<1x128xf32>, vector<1x128xf32> -> vector<1x896xf32>
    %202 = tpu.concatenate %193, %201 in 0 : vector<1x896xf32>, vector<1x896xf32> -> vector<2x896xf32>
    %c0_75 = arith.constant 0 : index
    %c0_76 = arith.constant 0 : index
    %203 = vector.load %arg5[%c0_75, %c0_76] : memref<896x32xf32, #tpu.memory_space<vmem>>, vector<896x32xf32>
    %cst_77 = arith.constant dense<0.000000e+00> : vector<2x32xf32>
    %204 = tpu.matmul %202, %203, %cst_77 {dimension_numbers = #tpu.dot_dimension_numbers<[1], [0], [0], [1], [0, 0, 1, 1], [], []>} : vector<2x896xf32>, vector<896x32xf32>, vector<2x32xf32> -> vector<2x32xf32>
    %c0_78 = arith.constant 0 : index
    %c0_79 = arith.constant 0 : index
    %205 = vector.load %arg6[%c0_78, %c0_79] : memref<2x32xf32, #tpu.memory_space<vmem>>, vector<2x32xf32>
    tpu.vector_store %arg6[%c0_78, %c0_79], %204 {strides = array<i32>} : memref<2x32xf32, #tpu.memory_space<vmem>>, vector<2x32xf32>,
    return
  }
}

</mosaic_0001>

<bundles_post_ra>
// kernel: encoder_forward.1
= control target key start
LH: loop header
LB: loop body
LE: loop exit
PB: predicated region body
PF: predicated region fallthrough
CT: control target
= control target key end

     0   :  { %vm78_vm0 = vcmask 261120   ;;  %s3922_s0 = inlined_call_operand.vmem [shape: f32[56,160], index: 0, kind: input, shape index: {}]   ;;  %s3923_s1 = inlined_call_operand.vmem [shape: f32[160,256], index: 1, kind: input, shape index: {}]   ;;  %s3924_s2 = inlined_call_operand.vmem [shape: f32[640,256], index: 2, kind: input, shape index: {}]   ;;  %s3925_s3 = inlined_call_operand.vmem [shape: f32[2,28,56], index: 3, kind: input, shape index: {}]   ;;  %s3926_s4 = inlined_call_operand.vmem [shape: f32[2,14,28], index: 4, kind: input, shape index: {}]   ;;  %s3927_s5 = inlined_call_operand.vmem [shape: f32[896,32], index: 5, kind: input, shape index: {}]   ;;  %s3928_s6 = inlined_call_operand.hbm [shape: f32[2,32], index: 6, kind: output, shape index: {}]  }
   0x1   :  { %v39_v0 = vld [vmem:[%s3923_s1 + $0x8] sm:$0xff]  ;;  %v41_v1 = vld [vmem:[%s3923_s1 + $0x18] sm:$0xff]  ;;  %v38_v2 = vld [vmem:[%s3923_s1] sm:$0xff] }
   0x2   :  { %v2168_v3 = vpack.c.bf16 %v41_v1, %v39_v0  ;;  %v40_v4 = vld [vmem:[%s3923_s1 + $0x10] sm:$0xff]  ;;  %v43_v5 = vld [vmem:[%s3923_s1 + $0x28] sm:$0xff]  ;;  %v45_v6 = vld [vmem:[%s3923_s1 + $0x38] sm:$0xff] }
   0x3   :  { %v2170_v7 = vpack.c.bf16 %v40_v4, %v38_v2  ;;  %v2172_v8 = vpack.c.bf16 %v45_v6, %v43_v5  ;;  %v42_v9 = vld [vmem:[%s3923_s1 + $0x20] sm:$0xff]  ;;  %v44_v10 = vld [vmem:[%s3923_s1 + $0x30] sm:$0xff]  ;;  %v47_v11 = vld [vmem:[%s3923_s1 + $0x48] sm:$0xff] }
   0x4   :  { %2169 = vmatprep.subr.bf16.mxu0 %v2168_v3  ;;  %v49_v12 = vld [vmem:[%s3923_s1 + $0x58] sm:$0xff]  ;;  %v2174_v13 = vpack.c.bf16 %v44_v10, %v42_v9  ;;  %v46_v15 = vld [vmem:[%s3923_s1 + $0x40] sm:$0xff]  ;;  %v48_v16 = vld [vmem:[%s3923_s1 + $0x50] sm:$0xff] }
   0x5   :  { %2171 = vmatpush1.bf16.msra.mxu0 %v2170_v7  ;;  %v2176_v14 = vpack.c.bf16 %v49_v12, %v47_v11  ;;  %v51_v17 = vld [vmem:[%s3923_s1 + $0x68] sm:$0xff]  ;;  %v53_v18 = vld [vmem:[%s3923_s1 + $0x78] sm:$0xff]  ;;  %v2178_v19 = vpack.c.bf16 %v48_v16, %v46_v15  ;;  %v50_v21 = vld [vmem:[%s3923_s1 + $0x60] sm:$0xff] }
   0x6   :  { %2173 = vmatprep.subr.bf16.mxu0 %v2172_v8  ;;  %v2180_v20 = vpack.c.bf16 %v53_v18, %v51_v17  ;;  %v52_v22 = vld [vmem:[%s3923_s1 + $0x70] sm:$0xff]  ;;  %v55_v23 = vld [vmem:[%s3923_s1 + $0x88] sm:$0xff]  ;;  %v57_v24 = vld [vmem:[%s3923_s1 + $0x98] sm:$0xff] }
   0x7   :  { %v2182_v25 = vpack.c.bf16 %v52_v22, %v50_v21  ;;  %v2184_v26 = vpack.c.bf16 %v57_v24, %v55_v23  ;;  %v54_v27 = vld [vmem:[%s3923_s1 + $0x80] sm:$0xff]  ;;  %v56_v28 = vld [vmem:[%s3923_s1 + $0x90] sm:$0xff]  ;;  %v25_v29 = vld [vmem:[%s3922_s0 + $0x8] sm:$0xff] }
   0x8   :  { %v59_v30 = vld [vmem:[%s3923_s1 + $0xa8] sm:$0xff]  ;;  %v61_v31 = vld [vmem:[%s3923_s1 + $0xb8] sm:$0xff]  ;;  %1866 = vmatprep.mubr.msk.f32.mxu0 %vm78_vm0, %v25_v29  ;;  %v2186_v32 = vpack.c.bf16 %v56_v28, %v54_v27  ;;  %v58_v34 = vld [vmem:[%s3923_s1 + $0xa0] sm:$0xff] }
   0x9   :  { %2175 = vmatpush1.bf16.msra.mxu0 %v2174_v13  ;;  %v2188_v33 = vpack.c.bf16 %v61_v31, %v59_v30  ;;  %v60_v35 = vld [vmem:[%s3923_s1 + $0xb0] sm:$0xff]  ;;  %v63_v36 = vld [vmem:[%s3923_s1 + $0xc8] sm:$0xff]  ;;  %v65_v37 = vld [vmem:[%s3923_s1 + $0xd8] sm:$0xff] }
   0xa   :  { %2177 = vmatprep.subr.bf16.mxu0 %v2176_v14 }
   0xd   :  { %2179 = vmatpush1.bf16.msra.mxu0 %v2178_v19 }
   0xe   :  { %2181 = vmatprep.subr.bf16.mxu0 %v2180_v20 }
  0x11   :  { %2183 = vmatpush1.bf16.msra.mxu0 %v2182_v25 }
  0x12   :  { %2185 = vmatprep.subr.bf16.mxu0 %v2184_v26 }
  0x13   :  { %11 = vsyncpa [#allocation3], 0  ;;  %v2190_v38 = vpack.c.bf16 %v60_v35, %v58_v34  ;;  %v2192_v39 = vpack.c.bf16 %v65_v37, %v63_v36  ;;  %v62_v40 = vld [vmem:[%s3923_s1 + $0xc0] sm:$0xff]  ;;  %v64_v41 = vld [vmem:[%s3923_s1 + $0xd0] sm:$0xff]  ;;  %vm312_vm1 = vcmask 457728   ;;  %s2586_s11 = smov 64  }
  0x14   :  { %v67_v42 = vld [vmem:[%s3923_s1 + $0xe8] sm:$0xff]  ;;  %v69_v43 = vld [vmem:[%s3923_s1 + $0xf8] sm:$0xff]  ;;  %v2194_v44 = vpack.c.bf16 %v64_v41, %v62_v40  ;;  %v66_v46 = vld [vmem:[%s3923_s1 + $0xe0] sm:$0xff]  ;;  %s2587_s21 = smov 32   ;;  %s2588_s27 = smov 16   ;;  %vm610_vm2 = vcmask 1040384  }
  0x15   :  { %2187 = vmatpush1.bf16.msra.mxu0 %v2186_v32  ;;  %v2196_v45 = vpack.c.bf16 %v69_v43, %v67_v42  ;;  %v68_v47 = vld [vmem:[%s3923_s1 + $0xf0] sm:$0xff]  ;;  %v71_v48 = vld [vmem:[%s3923_s1 + $0x108] sm:$0xff]  ;;  %v73_v49 = vld [vmem:[%s3923_s1 + $0x118] sm:$0xff]  ;;  %s2589_s23 = smov 8   ;;  %vm577_vm5 = vcmask 1041408   ;;  %s2592_s18 = smov 4  }
  0x16   :  { %2189 = vmatprep.subr.bf16.mxu0 %v2188_v33  ;;  %v2198_v50 = vpack.c.bf16 %v68_v47, %v66_v46  ;;  %v2200_v51 = vpack.c.bf16 %v73_v49, %v71_v48  ;;  %v70_v52 = vld [vmem:[%s3923_s1 + $0x100] sm:$0xff]  ;;  %v72_v53 = vld [vmem:[%s3923_s1 + $0x110] sm:$0xff]  ;;  %v75_v54 = vld [vmem:[%s3923_s1 + $0x128] sm:$0xff]  ;;  %s2595_s16 = smov [#allocation2]  }
  0x17   :  { %v77_v55 = vld [vmem:[%s3923_s1 + $0x138] sm:$0xff]  ;;  %v2202_v56 = vpack.c.bf16 %v72_v53, %v70_v52  ;;  %v74_v58 = vld [vmem:[%s3923_s1 + $0x120] sm:$0xff]  ;;  %v76_v59 = vld [vmem:[%s3923_s1 + $0x130] sm:$0xff]  ;;  %s1858_s17 = sshll.u32 %s2595_s16, 4  ;;  %s1859_s17 = int_to_ptr.vmem [resolvable:$true] %s1858_s17 }
  0x18   :  { %v2204_v57 = vpack.c.bf16 %v77_v55, %v75_v54  ;;  %v2206_v60 = vpack.c.bf16 %v76_v59, %v74_v58  ;;  %v24_v61 = vld [vmem:[%s3922_s0] sm:$0xff]  ;;  %v27_v62 = vld [vmem:[%s3922_s0 + $0x18] sm:$0xff]  ;;  %v26_v63 = vld [vmem:[%s3922_s0 + $0x10] sm:$0xff]  ;;  %p2567_p1 = scmp.lt.s32.totalorder %s1859_s17, %s1859_s17 }
  0x19   :  { %2191 = vmatpush1.bf16.msra.mxu0 %v2190_v38  ;;  %v29_v0 = vld [vmem:[%s3922_s0 + $0x28] sm:$0xff]  ;;  %v28_v1 = vld [vmem:[%s3922_s0 + $0x20] sm:$0xff]  ;;  %v31_v2 = vld [vmem:[%s3922_s0 + $0x38] sm:$0xff] }
  0x1a   :  { %2193 = vmatprep.subr.bf16.mxu0 %v2192_v39  ;;  %v30_v3 = vld [vmem:[%s3922_s0 + $0x30] sm:$0xff]  ;;  %v33_v4 = vld [vmem:[%s3922_s0 + $0x48] sm:$0xff]  ;;  %v32_v5 = vld [vmem:[%s3922_s0 + $0x40] sm:$0xff] }
  0x1b   :  { %v35_v6 = vld [vmem:[%s3922_s0 + $0x58] sm:$0xff]  ;;  %v34_v7 = vld [vmem:[%s3922_s0 + $0x50] sm:$0xff]  ;;  %v37_v8 = vld [vmem:[%s3922_s0 + $0x68] sm:$0xff] }
  0x1c   :  { %v36_v9 = vld [vmem:[%s3922_s0 + $0x60] sm:$0xff] }
  0x1d   :  { %2195 = vmatpush1.bf16.msra.mxu0 %v2194_v44  ;;  %v308_v10 = vld [vmem:[%s3925_s3] sm:$0xff] }
  0x1e   :  { %2197 = vmatprep.subr.bf16.mxu0 %v2196_v45  ;;  %2085 = vmatprep.mubr.msk.f32.mxu1 %vm312_vm1, %v308_v10 }
  0x21   :  { %2199 = vmatpush1.bf16.msra.mxu0 %v2198_v50 }
  0x22   :  { %2201 = vmatprep.subr.bf16.mxu0 %v2200_v51 }
  0x25   :  { %2203 = vmatpush1.bf16.msra.mxu0 %v2202_v56 }
  0x26   :  { %2205 = vmatprep.subr.bf16.mxu0 %v2204_v57 }
  0x29   :  { %2207 = vmatpush1.bf16.msra.mxu0 %v2206_v60 }
  0x2c   :  { %165 = vmatmul.mubr.f32.vlgmr.msra.gmra.mrb[0].mxu0 %v24_v61 }
  0x2d   :  { %1867 = vmatprep.mubr.msk.f32.mxu0 %vm78_vm0, %v27_v62 }
  0x30   :  { %171 = vmatmul.mubr.f32.gmra.mrb[2].mxu0 %v26_v63 }
  0x31   :  { %1868 = vmatprep.mubr.msk.f32.mxu0 %vm78_vm0, %v29_v0 }
  0x34   :  { %177 = vmatmul.mubr.f32.gmra.mrb[4].mxu0 %v28_v1 }
  0x35   :  { %1869 = vmatprep.mubr.msk.f32.mxu0 %vm78_vm0, %v31_v2 }
  0x38   :  { %183 = vmatmul.mubr.f32.gmra.mrb[6].mxu0 %v30_v3 }
  0x39   :  { %1870 = vmatprep.mubr.msk.f32.mxu0 %vm78_vm0, %v33_v4 }
  0x3c   :  { %189 = vmatmul.mubr.f32.gmra.mrb[8].mxu0 %v32_v5 }
  0x3d   :  { %1871 = vmatprep.mubr.msk.f32.mxu0 %vm78_vm0, %v35_v6 }
  0x40   :  { %195 = vmatmul.mubr.f32.gmra.mrb[10].mxu0 %v34_v7 }
  0x41   :  { %1872 = vmatprep.mubr.msk.f32.mxu0 %vm78_vm0, %v37_v8 }
  0x44   :  { %201 = vmatmul.mubr.f32.gmra.mrb[12].mxu0 %v36_v9 }
  0xff   :  { %v166_v11 = vpop.f32.mrb[0].mxu0 }
 0x100   :  { %v168_v12 = vpop.f32.mrb[1].mxu0  ;;  %v231_v15 = vmul.f32 %v166_v11, %v166_v11 }
 0x101   :  { %v301_v13 = vmax.f32 %v166_v11, %v168_v12  ;;  %v232_v19 = vmul.f32 %v168_v12, %v168_v12 }
 0x103   :  { %v172_v14 = vpop.f32.mrb[2].mxu0 }
 0x104   :  { %v207_v16 = vadd.f32 %v172_v14, %v166_v11  ;;  %v233_v17 = vmul.f32 %v172_v14, %v172_v14  ;;  %v174_v18 = vpop.f32.mrb[3].mxu0 }
 0x105   :  { %v219_v20 = vadd.f32 %v174_v18, %v168_v12  ;;  %v234_v21 = vmul.f32 %v174_v18, %v174_v18  ;;  %v302_v22 = vmax.f32 %v172_v14, %v174_v18 }
 0x106   :  { %v245_v23 = vadd.f32 %v233_v17, %v231_v15 }
 0x107   :  { %v257_v24 = vadd.f32 %v234_v21, %v232_v19  ;;  %v2804_v25 = vpack.c.bf16 %v302_v22, %v301_v13  ;;  %v178_v26 = vpop.f32.mrb[4].mxu0  ;;  %v309_v13 = vld [vmem:[%s3925_s3 + $0x8] sm:$0xff] }
 0x108   :  { %v208_v27 = vadd.f32 %v207_v16, %v178_v26  ;;  %v235_v28 = vmul.f32 %v178_v26, %v178_v26  ;;  %v180_v29 = vpop.f32.mrb[5].mxu0 }
 0x109   :  { %v220_v30 = vadd.f32 %v219_v20, %v180_v29  ;;  %v236_v31 = vmul.f32 %v180_v29, %v180_v29  ;;  %v303_v32 = vmax.f32 %v178_v26, %v180_v29  ;;  %2209 = vmatprep.subr.bf16.mxu1 %v2804_v25 }
 0x10a   :  { %v246_v33 = vadd.f32 %v245_v23, %v235_v28  ;;  %2211 = vmatpush3.bf16.msra.mxu1 %v2804_v25 }
 0x10b   :  { %v258_v34 = vadd.f32 %v257_v24, %v236_v31  ;;  %v184_v35 = vpop.f32.mrb[6].mxu0 }
 0x10c   :  { %v209_v36 = vadd.f32 %v208_v27, %v184_v35  ;;  %v237_v37 = vmul.f32 %v184_v35, %v184_v35  ;;  %v186_v38 = vpop.f32.mrb[7].mxu0 }
 0x10d   :  { %v221_v39 = vadd.f32 %v220_v30, %v186_v38  ;;  %v238_v40 = vmul.f32 %v186_v38, %v186_v38  ;;  %v304_v41 = vmax.f32 %v184_v35, %v186_v38  ;;  %v1877_v38 = vld [vmem:[%s3925_s3 + $0x20] sm:$0xff] }
 0x10e   :  { %v247_v42 = vadd.f32 %v246_v33, %v237_v37  ;;  %v311_v37 = vld [vmem:[%s3925_s3 + $0x18] sm:$0xf] }
 0x10f   :  { %v259_v43 = vadd.f32 %v258_v34, %v238_v40  ;;  %v2212_v44 = vpack.c.bf16 %v304_v41, %v303_v32  ;;  %v190_v45 = vpop.f32.mrb[8].mxu0  ;;  %v1879_v41 = vld [vmem:[%s3925_s3 + $0x30] sm:$0xff] }
 0x110   :  { %v210_v46 = vadd.f32 %v209_v36, %v190_v45  ;;  %v239_v47 = vmul.f32 %v190_v45, %v190_v45  ;;  %v192_v48 = vpop.f32.mrb[9].mxu0  ;;  %v310_v36 = vld [vmem:[%s3925_s3 + $0x10] sm:$0xff] }
 0x111   :  { %v222_v49 = vadd.f32 %v221_v39, %v192_v48  ;;  %v240_v50 = vmul.f32 %v192_v48, %v192_v48  ;;  %v305_v51 = vmax.f32 %v190_v45, %v192_v48  ;;  %2213 = vmatprep.subr.bf16.mxu1 %v2212_v44  ;;  %v1878_v39 = vld [vmem:[%s3925_s3 + $0x28] sm:$0xff]  ;;  %v710_v48 = vld [vmem:[%s3924_s2] sm:$0xff] }
 0x112   :  { %v248_v52 = vadd.f32 %v247_v42, %v239_v47  ;;  %2215 = vmatpush3.bf16.msra.mxu1 %v2212_v44  ;;  %v713_v47 = vld [vmem:[%s3924_s2 + $0x18] sm:$0xff] }
 0x113   :  { %v260_v53 = vadd.f32 %v259_v43, %v240_v50  ;;  %v196_v54 = vpop.f32.mrb[10].mxu0  ;;  %v1880_v43 = vld [vmem:[%s3925_s3 + $0x38] sm:$0xf] }
 0x114   :  { %v211_v55 = vadd.f32 %v210_v46, %v196_v54  ;;  %v241_v56 = vmul.f32 %v196_v54, %v196_v54  ;;  %v198_v57 = vpop.f32.mrb[11].mxu0  ;;  %v711_v46 = vld [vmem:[%s3924_s2 + $0x8] sm:$0xff] }
 0x115   :  { %v223_v58 = vadd.f32 %v222_v49, %v198_v57  ;;  %v242_v59 = vmul.f32 %v198_v57, %v198_v57  ;;  %v306_v60 = vmax.f32 %v196_v54, %v198_v57  ;;  %v2232_v50 = vpack.c.bf16 %v713_v47, %v711_v46  ;;  %v714_v57 = vld [vmem:[%s3924_s2 + $0x20] sm:$0xff] }
 0x116   :  { %v249_v61 = vadd.f32 %v248_v52, %v241_v56  ;;  %v715_v52 = vld [vmem:[%s3924_s2 + $0x28] sm:$0xff] }
 0x117   :  { %v261_v62 = vadd.f32 %v260_v53, %v242_v59  ;;  %v2216_v63 = vpack.c.bf16 %v306_v60, %v305_v51  ;;  %v202_v0 = vpop.f32.mrb[12].mxu0  ;;  %v712_v51 = vld [vmem:[%s3924_s2 + $0x10] sm:$0xff]  ;;  %v717_v53 = vld [vmem:[%s3924_s2 + $0x38] sm:$0xff]  ;;  %v719_v59 = vld [vmem:[%s3924_s2 + $0x48] sm:$0xff] }
 0x118   :  { %v212_v1 = vadd.f32 %v211_v55, %v202_v0  ;;  %v243_v2 = vmul.f32 %v202_v0, %v202_v0  ;;  %v204_v3 = vpop.f32.mrb[13].mxu0  ;;  %v2234_v55 = vpack.c.bf16 %v712_v51, %v710_v48  ;;  %v2236_v56 = vpack.c.bf16 %v717_v53, %v715_v52  ;;  %v721_v60 = vld [vmem:[%s3924_s2 + $0x58] sm:$0xff]  ;;  %v747_v48 = vld [vmem:[%s3924_s2 + $0x128] sm:$0xff] }
 0x119   :  { %v224_v4 = vadd.f32 %v223_v58, %v204_v3  ;;  %v244_v5 = vmul.f32 %v204_v3, %v204_v3  ;;  %v307_v6 = vmax.f32 %v202_v0, %v204_v3  ;;  %2217 = vmatprep.subr.bf16.mxu1 %v2216_v63  ;;  %v716_v58 = vld [vmem:[%s3924_s2 + $0x30] sm:$0xff]  ;;  %v2240_v0 = vpack.c.bf16 %v721_v60, %v719_v59  ;;  %v723_v3 = vld [vmem:[%s3924_s2 + $0x68] sm:$0xff] }
 0x11a   :  { %v213_v7 = vrot.slane %v212_v1, 4  ;;  %v250_v8 = vadd.f32 %v249_v61, %v243_v2  ;;  %2219 = vmatpush3.bf16.msra.mxu1 %v2216_v63  ;;  %v720_v2 = vld [vmem:[%s3924_s2 + $0x50] sm:$0xff]  ;;  %v751_v60 = vld [vmem:[%s3924_s2 + $0x148] sm:$0xff] }
 0x11b   :  { %v225_v9 = vrot.slane %v224_v4, 4  ;;  %v262_v10 = vadd.f32 %v261_v62, %v244_v5  ;;  %2083 = vmatprep.subr.mxu1 %v307_v6  ;;  %v2238_v62 = vpack.c.bf16 %v716_v58, %v714_v57  ;;  %v748_v57 = vld [vmem:[%s3924_s2 + $0x130] sm:$0xff] }
 0x11c   :  { %v214_v11 = vadd.f32 %v213_v7, %v212_v1  ;;  %v251_v12 = vrot.slane %v250_v8, 4  ;;  %v718_v1 = vld [vmem:[%s3924_s2 + $0x40] sm:$0xff] }
 0x11d   :  { %v226_v14 = vadd.f32 %v225_v9, %v224_v4  ;;  %v263_v15 = vrot.slane %v262_v10, 4  ;;  %v725_v4 = vld [vmem:[%s3924_s2 + $0x78] sm:$0xff]  ;;  %v722_v9 = vld [vmem:[%s3924_s2 + $0x60] sm:$0xff] }
 0x11e   :  { %v252_v16 = vadd.f32 %v251_v12, %v250_v8  ;;  %2084 = vmatpush3.msra.mxu1 %v307_v6  ;;  %v215_v17 = vrot.slane %v214_v11, 2  ;;  %v2244_v8 = vpack.c.bf16 %v725_v4, %v723_v3  ;;  %v729_v12 = vld [vmem:[%s3924_s2 + $0x98] sm:$0xff] }
 0x11f   :  { %v264_v18 = vadd.f32 %v263_v15, %v262_v10  ;;  %2221 = vmatprep.subr.bf16.mxu1 %v2804_v25  ;;  %2086 = vmatmul.mubr.msk.f32.vlgmr.msra.gmra.mrb[0].mxu1 %vm312_vm1, %v309_v13  ;;  %v227_v19 = vrot.slane %v226_v14, 2  ;;  %v724_v10 = vld [vmem:[%s3924_s2 + $0x70] sm:$0xff]  ;;  %v726_v15 = vld [vmem:[%s3924_s2 + $0x80] sm:$0xff] }
 0x120   :  { %v253_v20 = vrot.slane %v252_v16, 2  ;;  %2223 = vmatpush3.bf16.msra.mxu1 %v2804_v25  ;;  %v216_v21 = vadd.f32 %v215_v17, %v214_v11  ;;  %2088 = vmatprep.mubr.msk.f32.mxu1 %vm312_vm1, %v310_v36  ;;  %v727_v11 = vld [vmem:[%s3924_s2 + $0x88] sm:$0xff]  ;;  %v2246_v13 = vpack.c.bf16 %v724_v10, %v722_v9  ;;  %v754_v9 = vld [vmem:[%s3924_s2 + $0x160] sm:$0xff]  ;;  %v756_v10 = vld [vmem:[%s3924_s2 + $0x170] sm:$0xff] }
 0x121   :  { %v265_v22 = vrot.slane %v264_v18, 2  ;;  %2225 = vmatprep.subr.bf16.mxu1 %v2212_v44  ;;  %v228_v23 = vadd.f32 %v227_v19, %v226_v14  ;;  %v2248_v14 = vpack.c.bf16 %v729_v12, %v727_v11  ;;  %v731_v17 = vld [vmem:[%s3924_s2 + $0xa8] sm:$0xff] }
 0x122   :  { %v217_v24 = vrot.slane %v216_v21, 1  ;;  %v254_v26 = vadd.f32 %v253_v20, %v252_v16  ;;  %v728_v16 = vld [vmem:[%s3924_s2 + $0x90] sm:$0xff] }
 0x123   :  { %v229_v27 = vrot.slane %v228_v23, 1  ;;  %v266_v28 = vadd.f32 %v265_v22, %v264_v18  ;;  %2089 = vmatmul.mubr.msk.f32.gmra.mrb[2].mxu1 %vm312_vm1, %v311_v37  ;;  %v733_v18 = vld [vmem:[%s3924_s2 + $0xb8] sm:$0xff]  ;;  %v2250_v19 = vpack.c.bf16 %v728_v16, %v726_v15  ;;  %v732_v22 = vld [vmem:[%s3924_s2 + $0xb0] sm:$0xff]  ;;  %v758_v16 = vld [vmem:[%s3924_s2 + $0x180] sm:$0xff] }
 0x124   :  { %2227 = vmatpush3.bf16.msra.mxu1 %v2212_v44  ;;  %v218_v29 = vadd.f32 %v217_v24, %v216_v21  ;;  %v255_v30 = vrot.slane %v254_v26, 1  ;;  %2105 = vmatprep.mubr.msk.f32.mxu1 %vm312_vm1, %v1877_v38  ;;  %v2252_v20 = vpack.c.bf16 %v733_v18, %v731_v17  ;;  %v730_v21 = vld [vmem:[%s3924_s2 + $0xa0] sm:$0xff]  ;;  %v737_v24 = vld [vmem:[%s3924_s2 + $0xd8] sm:$0xff]  ;;  %v743_v38 = vld [vmem:[%s3924_s2 + $0x108] sm:$0xff] }
 0x125   :  { %2229 = vmatprep.subr.bf16.mxu1 %v2216_v63  ;;  %v230_v31 = vadd.f32 %v229_v27, %v228_v23  ;;  %v267_v32 = vrot.slane %v266_v28, 1  ;;  %v735_v23 = vld [vmem:[%s3924_s2 + $0xc8] sm:$0xff]  ;;  %v760_v17 = vld [vmem:[%s3924_s2 + $0x190] sm:$0xff] }
 0x126   :  { %v256_v33 = vadd.f32 %v255_v30, %v254_v26  ;;  %v2254_v26 = vpack.c.bf16 %v732_v22, %v730_v21  ;;  %v2256_v27 = vpack.c.bf16 %v737_v24, %v735_v23  ;;  %v739_v30 = vld [vmem:[%s3924_s2 + $0xe8] sm:$0xff]  ;;  %v762_v21 = vld [vmem:[%s3924_s2 + $0x1a0] sm:$0xff]  ;;  %v764_v22 = vld [vmem:[%s3924_s2 + $0x1b0] sm:$0xff] }
 0x127   :  { %v269_v34 = vadd.f32 %v230_v31, %v218_v29  ;;  %v268_v35 = vadd.f32 %v267_v32, %v266_v28  ;;  %v734_v28 = vld [vmem:[%s3924_s2 + $0xc0] sm:$0xff]  ;;  %v736_v29 = vld [vmem:[%s3924_s2 + $0xd0] sm:$0xff]  ;;  %v741_v31 = vld [vmem:[%s3924_s2 + $0xf8] sm:$0xff]  ;;  %v2286_v23 = vpack.c.bf16 %v764_v22, %v762_v21 }
 0x128   :  { %2231 = vmatpush3.bf16.msra.mxu1 %v2216_v63  ;;  %v2258_v32 = vpack.c.bf16 %v736_v29, %v734_v28  ;;  %v763_v18 = vld [vmem:[%s3924_s2 + $0x1a8] sm:$0xff]  ;;  %v766_v28 = vld [vmem:[%s3924_s2 + $0x1c0] sm:$0xff]  ;;  %v768_v29 = vld [vmem:[%s3924_s2 + $0x1d0] sm:$0xff] }
 0x129   :  { %2103 = vmatprep.subr.mxu1 %v307_v6  ;;  %270 = vrot.lane.b32.xlu0 %v269_v34, %s2586_s11  ;;  %v282_v25 = vadd.f32 %v268_v35, %v256_v33  ;;  %v2260_v33 = vpack.c.bf16 %v741_v31, %v739_v30  ;;  %v740_v35 = vld [vmem:[%s3924_s2 + $0xf0] sm:$0xff]  ;;  %v767_v24 = vld [vmem:[%s3924_s2 + $0x1c8] sm:$0xff]  ;;  %v2290_v31 = vpack.c.bf16 %v768_v29, %v766_v28 }
 0x12a   :  { %v771_v30 = vld [vmem:[%s3924_s2 + $0x1e8] sm:$0xff] }
 0x12c   :  { %2104 = vmatpush3.msra.mxu1 %v307_v6  ;;  %v2242_v6 = vpack.c.bf16 %v720_v2, %v718_v1  ;;  %v752_v1 = vld [vmem:[%s3924_s2 + $0x150] sm:$0xff] }
 0x12d   :  { %283 = vrot.lane.b32.xlu0 %v282_v25, %s2586_s11  ;;  %2106 = vmatmul.mubr.msk.f32.vlgmr.msra.gmra.mrb[4].mxu1 %vm312_vm1, %v1878_v39  ;;  %v745_v39 = vld [vmem:[%s3924_s2 + $0x118] sm:$0xff] }
 0x12e   :  { %2108 = vmatprep.mubr.msk.f32.mxu1 %vm312_vm1, %v1879_v41  ;;  %2233 = vmatprep.subr.bf16.mxu1 %v2232_v50  ;;  %v742_v41 = vld [vmem:[%s3924_s2 + $0x100] sm:$0xff]  ;;  %v749_v50 = vld [vmem:[%s3924_s2 + $0x138] sm:$0xff] }
 0x12f   :  { %2235 = vmatpush1.bf16.msra.mxu1 %v2234_v55  ;;  %v2268_v58 = vpack.c.bf16 %v749_v50, %v747_v48 }
 0x130   :  { %2237 = vmatprep.subr.bf16.mxu1 %v2236_v56  ;;  %v746_v56 = vld [vmem:[%s3924_s2 + $0x120] sm:$0xff] }
 0x131   :  { %2109 = vmatmul.mubr.msk.f32.gmra.mrb[6].mxu1 %vm312_vm1, %v1880_v43  ;;  %v2270_v59 = vpack.c.bf16 %v748_v57, %v746_v56 }
 0x133   :  { %2239 = vmatpush1.bf16.msra.mxu1 %v2238_v62 }
 0x134   :  { %2241 = vmatprep.subr.bf16.mxu1 %v2240_v0  ;;  %v750_v0 = vld [vmem:[%s3924_s2 + $0x140] sm:$0xff] }
 0x135   :  { %v2274_v2 = vpack.c.bf16 %v752_v1, %v750_v0 }
 0x137   :  { %2243 = vmatpush1.bf16.msra.mxu1 %v2242_v6  ;;  %v757_v6 = vld [vmem:[%s3924_s2 + $0x178] sm:$0xff] }
 0x138   :  { %2245 = vmatprep.subr.bf16.mxu1 %v2244_v8 }
 0x13b   :  { %2247 = vmatpush1.bf16.msra.mxu1 %v2246_v13  ;;  %v759_v13 = vld [vmem:[%s3924_s2 + $0x188] sm:$0xff] }
 0x13c   :  { %2249 = vmatprep.subr.bf16.mxu1 %v2248_v14  ;;  %v761_v14 = vld [vmem:[%s3924_s2 + $0x198] sm:$0xff] }
 0x13d   :  { %v2280_v15 = vpack.c.bf16 %v761_v14, %v759_v13 }
 0x13f   :  { %2251 = vmatpush1.bf16.msra.mxu1 %v2250_v19  ;;  %v765_v19 = vld [vmem:[%s3924_s2 + $0x1b8] sm:$0xff] }
 0x140   :  { %2253 = vmatprep.subr.bf16.mxu1 %v2252_v20  ;;  %v2284_v20 = vpack.c.bf16 %v765_v19, %v763_v18 }
 0x143   :  { %2255 = vmatpush1.bf16.msra.mxu1 %v2254_v26  ;;  %v769_v26 = vld [vmem:[%s3924_s2 + $0x1d8] sm:$0xff] }
 0x144   :  { %2257 = vmatprep.subr.bf16.mxu1 %v2256_v27  ;;  %v2288_v27 = vpack.c.bf16 %v769_v26, %v767_v24 }
 0x147   :  { %2259 = vmatpush1.bf16.msra.mxu1 %v2258_v32  ;;  %v773_v32 = vld [vmem:[%s3924_s2 + $0x1f8] sm:$0xff] }
 0x148   :  { %2261 = vmatprep.subr.bf16.mxu1 %v2260_v33  ;;  %v770_v33 = vld [vmem:[%s3924_s2 + $0x1e0] sm:$0xff] }
 0x19b   :  { %v271_v40 = vpop.permute.xlu0 %270 }
 0x19c   :  { %v272_v42 = vadd.f32 %v271_v40, %v269_v34  ;;  %v738_v34 = vld [vmem:[%s3924_s2 + $0xe0] sm:$0xff]  ;;  %v2264_v40 = vpack.c.bf16 %v745_v39, %v743_v38  ;;  %v775_v38 = vld [vmem:[%s3924_s2 + $0x208] sm:$0xff]  ;;  %v777_v39 = vld [vmem:[%s3924_s2 + $0x218] sm:$0xff] }
 0x19e   :  { %273 = vrot.lane.b32.xlu1 %v272_v42, %s2587_s21 }
 0x19f   :  { %v284_v44 = vpop.permute.xlu0 %283 }
 0x1a0   :  { %v285_v45 = vadd.f32 %v284_v44, %v282_v25  ;;  %v2262_v25 = vpack.c.bf16 %v740_v35, %v738_v34  ;;  %v772_v34 = vld [vmem:[%s3924_s2 + $0x1f0] sm:$0xff]  ;;  %v2292_v35 = vpack.c.bf16 %v773_v32, %v771_v30 }
 0x1a2   :  { %286 = vrot.lane.b32.xlu1 %v285_v45, %s2587_s21  ;;  %2263 = vmatpush1.bf16.msra.mxu1 %v2262_v25  ;;  %v2294_v25 = vpack.c.bf16 %v772_v34, %v770_v33  ;;  %v774_v33 = vld [vmem:[%s3924_s2 + $0x200] sm:$0xff]  ;;  %v776_v34 = vld [vmem:[%s3924_s2 + $0x210] sm:$0xff] }
 0x1a3   :  { %2265 = vmatprep.subr.bf16.mxu1 %v2264_v40  ;;  %v2296_v40 = vpack.c.bf16 %v777_v39, %v775_v38 }
 0x1f2   :  { %v2851_v49 = vpop.f32.mrb[0].mxu1 }
 0x1f3   :  { %v2862_v54 = vpop.f32.mrb[1].mxu1 }
 0x1f6   :  { %v2950_v36 = vpop.f32.mrb[2].mxu1 }
 0x1f7   :  { %v2952_v37 = vpop.f32.mrb[3].mxu1 }
 0x200   :  { %v2966_v43 = vpop.f32.mrb[4].mxu1 }
 0x201   :  { %v513_v51 = vmax.f32 %v2851_v49, %v2966_v43 }
 0x210   :  { %v274_v61 = vpop.permute.xlu1 %273 }
 0x211   :  { %v2876_v63 = vadd.f32 %v274_v61, %v272_v42  ;;  %v744_v42 = vld [vmem:[%s3924_s2 + $0x110] sm:$0xff]  ;;  %v753_v61 = vld [vmem:[%s3924_s2 + $0x158] sm:$0xff] }
 0x212   :  { %v2266_v44 = vpack.c.bf16 %v744_v42, %v742_v41  ;;  %v2272_v62 = vpack.c.bf16 %v753_v61, %v751_v60  ;;  %v516_v41 = vlaneseq }
 0x213   :  { %276 = vrot.lane.b32.xlu0 %v2876_v63, %s2588_s27 }
 0x214   :  { %v287_v5 = vpop.permute.xlu1 %286  ;;  %2267 = vmatpush1.bf16.msra.mxu1 %v2266_v44  ;;  %v517_v42 = vshrl.u32 %v516_v41, 7 }
 0x215   :  { %v2892_v7 = vadd.f32 %v287_v5, %v285_v45  ;;  %v2968_v45 = vpop.f32.mrb[5].mxu1  ;;  %2269 = vmatprep.subr.bf16.mxu1 %v2268_v58  ;;  %v755_v5 = vld [vmem:[%s3924_s2 + $0x168] sm:$0xff] }
 0x216   :  { %v2970_v46 = vpop.f32.mrb[6].mxu1  ;;  %v512_v52 = vmax.f32 %v2862_v54, %v2968_v45  ;;  %v2276_v8 = vpack.c.bf16 %v757_v6, %v755_v5  ;;  %v549_v44 = vcvt.s32.f32 %v517_v42  ;;  %v546_v48 = vadd.s32 8, %v517_v42 }
 0x217   :  { %289 = vrot.lane.b32.xlu1 %v2892_v7, %s2588_s27  ;;  %v2972_v47 = vpop.f32.mrb[7].mxu1  ;;  %v515_v53 = vmax.f32 %v2950_v36, %v2970_v46  ;;  %v3078_v18 = vsub.s32 0, %v517_v42 }
 0x218   :  { %v514_v55 = vmax.f32 %v2952_v37, %v2972_v47  ;;  %2271 = vmatpush1.bf16.msra.mxu1 %v2270_v59  ;;  %v553_v56 = vadd.f32 0.5, %v549_v44  ;;  %v550_v57 = vcvt.s32.f32 %v546_v48  ;;  %v547_v59 = vadd.s32 16, %v517_v42  ;;  %v801_v48 = vld [vmem:[%s3924_s2 + $0x2d8] sm:$0xff] }
 0x219   :  { %2273 = vmatprep.subr.bf16.mxu1 %v2272_v62 }
 0x21a   :  { %v557_v62 = vmul.f32 0.071428575, %v553_v56  ;;  %v554_v0 = vadd.f32 0.5, %v550_v57 }
 0x21c   :  { %2275 = vmatpush1.bf16.msra.mxu1 %v2274_v2  ;;  %v548_v2 = vadd.s32 24, %v517_v42 }
 0x21d   :  { %2277 = vmatprep.subr.bf16.mxu1 %v2276_v8  ;;  %v561_v8 = vfloor.f32 %v557_v62 }
 0x21f   :  { %v565_v14 = vmul.f32 14.0, %v561_v8 }
 0x285   :  { %v277_v3 = vpop.permute.xlu0 %276 }
 0x286   :  { %v278_v4 = vadd.f32 %v277_v3, %v2876_v63  ;;  %v2278_v63 = vpack.c.bf16 %v756_v10, %v754_v9  ;;  %v551_v3 = vcvt.s32.f32 %v547_v59  ;;  %v558_v9 = vmul.f32 0.071428575, %v554_v0  ;;  %v780_v59 = vld [vmem:[%s3924_s2 + $0x230] sm:$0xff] }
 0x288   :  { %279 = vrot.lane.b32.xlu0 %v278_v4, %s2589_s23  ;;  %2279 = vmatpush1.bf16.msra.mxu1 %v2278_v63  ;;  %v552_v63 = vcvt.s32.f32 %v548_v2  ;;  %v783_v2 = vld [vmem:[%s3924_s2 + $0x248] sm:$0xff] }
 0x289   :  { %v290_v11 = vpop.permute.xlu1 %289  ;;  %2281 = vmatprep.subr.bf16.mxu1 %v2280_v15  ;;  %v562_v15 = vfloor.f32 %v558_v9 }
 0x28a   :  { %v291_v12 = vadd.f32 %v290_v11, %v2892_v7  ;;  %v2282_v7 = vpack.c.bf16 %v760_v17, %v758_v16  ;;  %v555_v11 = vadd.f32 0.5, %v551_v3  ;;  %v3076_v17 = vsub.f32 %v549_v44, %v565_v14 }
 0x28c   :  { %292 = vrot.lane.b32.xlu1 %v291_v12, %s2589_s23  ;;  %2283 = vmatpush1.bf16.msra.mxu1 %v2282_v7  ;;  %v559_v16 = vmul.f32 0.071428575, %v555_v11  ;;  %v566_v7 = vmul.f32 14.0, %v562_v15  ;;  %v782_v15 = vld [vmem:[%s3924_s2 + $0x240] sm:$0xff] }
 0x28d   :  { %2285 = vmatprep.subr.bf16.mxu1 %v2284_v20  ;;  %v623_v20 = vadd.f32 -1.0, %v3076_v17 }
 0x28e   :  { %v563_v19 = vfloor.f32 %v559_v16  ;;  %v3081_v21 = vsub.f32 %v550_v57, %v566_v7  ;;  %v798_v57 = vld [vmem:[%s3924_s2 + $0x2c0] sm:$0xff] }
 0x28f   :  { %vm627_vm3 = vcmp.gt.f32.partialorder %v623_v20, -0.5  ;;  %vm631_vm4 = vcmp.lt.f32.partialorder %v623_v20, 13.5  ;;  %v789_v20 = vld [vmem:[%s3924_s2 + $0x278] sm:$0xff] }
 0x290   :  { %2287 = vmatpush1.bf16.msra.mxu1 %v2286_v23  ;;  %v590_v23 = vadd.f32 -2.0, %v3076_v17  ;;  %v567_v26 = vmul.f32 14.0, %v563_v19  ;;  %v624_v28 = vadd.f32 -1.0, %v3081_v21  ;;  %v591_v36 = vadd.f32 -2.0, %v3081_v21  ;;  %vm3124_vm13 = vmand %vm627_vm3, %vm631_vm4  ;;  %v787_v19 = vld [vmem:[%s3924_s2 + $0x268] sm:$0xff] }
 0x291   :  { %2289 = vmatprep.subr.bf16.mxu1 %v2288_v27 }
 0x292   :  { %vm594_vm6 = vcmp.gt.f32.partialorder %v590_v23, -0.5  ;;  %vm598_vm7 = vcmp.lt.f32.partialorder %v590_v23, 13.5  ;;  %v3105_v47 = vsub.f32 %v551_v3, %v567_v26  ;;  %vm628_vm8 = vcmp.gt.f32.partialorder %v624_v28, -0.5  ;;  %v785_v3 = vld [vmem:[%s3924_s2 + $0x258] sm:$0xff] }
 0x293   :  { %vm632_vm11 = vcmp.lt.f32.partialorder %v624_v28, 13.5  ;;  %vm595_vm14 = vcmp.gt.f32.partialorder %v591_v36, -0.5  ;;  %vm3132_vm15 = vmand %vm594_vm6, %vm598_vm7  ;;  %vm599_vm0 = vcmp.lt.f32.partialorder %v591_v36, 13.5  ;;  %v2304_v11 = vpack.c.bf16 %v785_v3, %v783_v2  ;;  %v795_v36 = vld [vmem:[%s3924_s2 + $0x2a8] sm:$0xff]  ;;  %v804_v2 = vld [vmem:[%s3924_s2 + $0x2f0] sm:$0xff] }
 0x294   :  { %2291 = vmatpush1.bf16.msra.mxu1 %v2290_v31  ;;  %v625_v42 = vadd.f32 -1.0, %v3105_v47  ;;  %vm636_vm1 = vmand %vm628_vm8, %vm632_vm11  ;;  %v2308_v28 = vpack.c.bf16 %v789_v20, %v787_v19  ;;  %v807_v3 = vld [vmem:[%s3924_s2 + $0x308] sm:$0xff] }
 0x295   :  { %2293 = vmatprep.subr.bf16.mxu1 %v2292_v35  ;;  %vm3166_vm7 = vmand %vm595_vm14, %vm599_vm0 }
 0x296   :  { %vm629_vm4 = vcmp.gt.f32.partialorder %v625_v42, -0.5  ;;  %vm633_vm6 = vcmp.lt.f32.partialorder %v625_v42, 13.5  ;;  %v796_v42 = vld [vmem:[%s3924_s2 + $0x2b0] sm:$0xff] }
 0x297   :  { %vm3172_vm8 = vmand %vm629_vm4, %vm633_vm6  ;;  %vm643_vm6 = vcmask 1046528  }
 0x298   :  { %2295 = vmatpush1.bf16.msra.mxu1 %v2294_v25 }
 0x299   :  { %2297 = vmatprep.subr.bf16.mxu1 %v2296_v40 }
 0x2fa   :  { %v280_v50 = vpop.permute.xlu0 %279 }
 0x2fb   :  { %v281_v58 = vadd.f32 %v280_v50, %v278_v4  ;;  %v556_v4 = vadd.f32 0.5, %v552_v63 }
 0x2fd   :  { %v295_v60 = vmul.f32 0.0006377551, %v281_v58  ;;  %v778_v58 = vld [vmem:[%s3924_s2 + $0x220] sm:$0xff] }
 0x2fe   :  { %v293_v61 = vpop.permute.xlu1 %292 }
 0x2ff   :  { %v294_v1 = vadd.f32 %v293_v61, %v291_v12  ;;  %v297_v5 = vmul.f32 %v295_v60, %v295_v60  ;;  %v560_v12 = vmul.f32 0.071428575, %v556_v4  ;;  %v519_v22 = vrot.slane %v295_v60, %v3078_v18  ;;  %v784_v4 = vld [vmem:[%s3924_s2 + $0x250] sm:$0xff] }
 0x300   :  { %v592_v61 = vadd.f32 -2.0, %v3105_v47  ;;  %v2306_v26 = vpack.c.bf16 %v784_v4, %v782_v15  ;;  %v810_v4 = vld [vmem:[%s3924_s2 + $0x320] sm:$0xff] }
 0x301   :  { %v296_v6 = vmul.f32 0.0006377551, %v294_v1  ;;  %v564_v24 = vfloor.f32 %v560_v12  ;;  %v521_v29 = vsub.f32 %v513_v51, %v519_v22  ;;  %v520_v30 = vsub.f32 %v512_v52, %v519_v22  ;;  %v779_v52 = vld [vmem:[%s3924_s2 + $0x228] sm:$0xff] }
 0x302   :  { %v522_v31 = vsub.f32 %v514_v55, %v519_v22  ;;  %v523_v49 = vsub.f32 %v515_v53, %v519_v22  ;;  %v2298_v51 = vpack.c.bf16 %v776_v34, %v774_v33  ;;  %v781_v55 = vld [vmem:[%s3924_s2 + $0x238] sm:$0xff]  ;;  %v657_v22 = vadd.f32 1.0, %v3076_v17  ;;  %v791_v33 = vld [vmem:[%s3924_s2 + $0x288] sm:$0xff] }
 0x303   :  { %v298_v10 = vsub.f32 %v296_v6, %v297_v5  ;;  %v568_v54 = vmul.f32 14.0, %v564_v24  ;;  %v2300_v41 = vpack.c.bf16 %v781_v55, %v779_v52  ;;  %v793_v34 = vld [vmem:[%s3924_s2 + $0x298] sm:$0xff]  ;;  %v792_v52 = vld [vmem:[%s3924_s2 + $0x290] sm:$0xff] }
 0x305   :  { %v299_v13 = vadd.f32 0.0001, %v298_v10  ;;  %v3114_v38 = vsub.f32 %v552_v63, %v568_v54  ;;  %v2302_v63 = vpack.c.bf16 %v780_v59, %v778_v58  ;;  %v800_v58 = vld [vmem:[%s3924_s2 + $0x2d0] sm:$0xff]  ;;  %v803_v59 = vld [vmem:[%s3924_s2 + $0x2e8] sm:$0xff] }
 0x306   :  { %v808_v10 = vld [vmem:[%s3924_s2 + $0x310] sm:$0xff] }
 0x307   :  { %2558 = vrsqrt.f32 %v299_v13  ;;  %v626_v5 = vadd.f32 -1.0, %v3114_v38  ;;  %v593_v16 = vadd.f32 -2.0, %v3114_v38 }
 0x309   :  { %vm630_vm11 = vcmp.gt.f32.partialorder %v626_v5, -0.5  ;;  %vm601_vm0 = vcmp.lt.f32.partialorder %v593_v16, 13.5 }
 0x311   :  { %v2559_v27 = vpop.eup %2558 }
 0x312   :  { %v527_v32 = vrot.slane %v2559_v27, %v3078_v18 }
 0x314   :  { %v528_v43 = vmul.f32 %v527_v32, %v520_v30  ;;  %v529_v37 = vmul.f32 %v527_v32, %v521_v29  ;;  %v530_v45 = vmul.f32 %v527_v32, %v522_v31  ;;  %v531_v46 = vmul.f32 %v527_v32, %v523_v49  ;;  %v786_v29 = vld [vmem:[%s3924_s2 + $0x260] sm:$0xff]  ;;  %v788_v30 = vld [vmem:[%s3924_s2 + $0x270] sm:$0xff] }
 0x316   :  { %vm532_vm9 = vcmp.gt.f32.partialorder %v528_v43, 0.0  ;;  %v536_v53 = vmul.f32 0.01, %v528_v43  ;;  %vm533_vm10 = vcmp.gt.f32.partialorder %v529_v37, 0.0  ;;  %v537_v35 = vmul.f32 0.01, %v529_v37 }
 0x317   :  { %vm534_vm12 = vcmp.gt.f32.partialorder %v530_v45, 0.0  ;;  %v538_v25 = vmul.f32 0.01, %v530_v45  ;;  %v539_v62 = vmul.f32 0.01, %v531_v46  ;;  %vm535_vm3 = vcmp.gt.f32.partialorder %v531_v46, 0.0 }
 0x318   :  { %v3116_v39 = vsel %vm532_vm9, %v528_v43, %v536_v53  ;;  %v3118_v40 = vsel %vm533_vm10, %v529_v37, %v537_v35  ;;  %vm596_vm9 = vcmp.gt.f32.partialorder %v592_v61, -0.5  ;;  %vm600_vm10 = vcmp.lt.f32.partialorder %v592_v61, 13.5  ;;  %v805_v61 = vld [vmem:[%s3924_s2 + $0x2f8] sm:$0xff] }
 0x319   :  { %v611_v44 = vrot.slane %v3116_v39, 7  ;;  %v578_v50 = vrot.slane %v3116_v39, 6  ;;  %v612_v56 = vrot.slane %v3118_v40, 7  ;;  %v3143_v60 = vsel %vm534_vm12, %v530_v45, %v538_v25 }
 0x31a   :  { %v579_v6 = vrot.slane %v3118_v40, 6  ;;  %v614_v9 = vrot.slane %v3143_v60, 7  ;;  %v3170_v13 = vsel %vm535_vm3, %v531_v46, %v539_v62  ;;  %v581_v12 = vrot.slane %v3143_v60, 6  ;;  %v797_v46 = vld [vmem:[%s3924_s2 + $0x2b8] sm:$0xff] }
 0x31b   :  { %v622_v0 = vsel %vm610_vm2, 0.0, %v611_v44  ;;  %v589_v1 = vsel %vm577_vm5, 0.0, %v578_v50  ;;  %v613_v8 = vsel %vm610_vm2, %v611_v44, %v612_v56  ;;  %vm634_vm12 = vcmp.lt.f32.partialorder %v626_v5, 13.5  ;;  %v799_v44 = vld [vmem:[%s3924_s2 + $0x2c8] sm:$0xff]  ;;  %v809_v5 = vld [vmem:[%s3924_s2 + $0x318] sm:$0xff] }
 0x31c   :  { %1885 = vmatprep.mubr.msk.f32.mxu1 %vm3124_vm13, %v622_v0  ;;  %v580_v7 = vsel %vm577_vm5, %v578_v50, %v579_v6  ;;  %v615_v23 = vsel %vm610_vm2, %v612_v56, %v614_v9  ;;  %v616_v24 = vrot.slane %v3170_v13, 7  ;;  %vm604_vm13 = vmand %vm596_vm9, %vm600_vm10  ;;  %v582_v31 = vsel %vm577_vm5, %v579_v6, %v581_v12 }
 0x31d   :  { %1886 = vmatmul.mubr.msk.f32.vlgmr.msra.gmra.mrb[8].mxu1 %vm3132_vm15, %v589_v1  ;;  %vm3201_vm14 = vmand %vm630_vm11, %vm634_vm12  ;;  %vm597_vm15 = vcmp.gt.f32.partialorder %v593_v16, -0.5  ;;  %v583_v32 = vrot.slane %v3170_v13, 6  ;;  %vm665_vm3 = vcmp.lt.f32.partialorder %v657_v22, 13.5  ;;  %v644_v54 = vrot.slane %v3116_v39, 1  ;;  %v802_v1 = vld [vmem:[%s3924_s2 + $0x2e0] sm:$0xff]  ;;  %v812_v16 = vld [vmem:[%s3924_s2 + $0x330] sm:$0xff] }
 0x31e   :  { %2299 = vmatpush1.bf16.msra.mxu1 %v2298_v51  ;;  %1887 = vmatprep.mubr.msk.f32.mxu1 %vm636_vm1, %v613_v8  ;;  %vm661_vm1 = vcmp.gt.f32.partialorder %v657_v22, -0.5  ;;  %v617_v49 = vsel %vm610_vm2, %v614_v9, %v616_v24  ;;  %v645_v43 = vrot.slane %v3118_v40, 1  ;;  %vm605_vm4 = vmand %vm597_vm15, %vm601_vm0  ;;  %v2310_v37 = vpack.c.bf16 %v788_v30, %v786_v29  ;;  %v790_v51 = vld [vmem:[%s3924_s2 + $0x280] sm:$0xff]  ;;  %v819_v24 = vld [vmem:[%s3924_s2 + $0x368] sm:$0xff] }
 0x31f   :  { %2301 = vmatprep.subr.bf16.mxu1 %v2300_v41  ;;  %v2312_v45 = vpack.c.bf16 %v793_v34, %v791_v33  ;;  %v584_v55 = vsel %vm577_vm5, %v581_v12, %v583_v32  ;;  %v2314_v35 = vpack.c.bf16 %v792_v52, %v790_v51  ;;  %v2316_v25 = vpack.c.bf16 %v797_v46, %v795_v36  ;;  %v794_v41 = vld [vmem:[%s3924_s2 + $0x2a0] sm:$0xff]  ;;  %v817_v12 = vld [vmem:[%s3924_s2 + $0x358] sm:$0xff]  ;;  %v820_v30 = vld [vmem:[%s3924_s2 + $0x370] sm:$0xff] }
 0x320   :  { %v646_v53 = vsel %vm643_vm6, %v644_v54, %v645_v43  ;;  %v2318_v50 = vpack.c.bf16 %v796_v42, %v794_v41  ;;  %v2320_v56 = vpack.c.bf16 %v801_v48, %v799_v44  ;;  %v2322_v62 = vpack.c.bf16 %v800_v58, %v798_v57  ;;  %v806_v9 = vld [vmem:[%s3924_s2 + $0x300] sm:$0xff]  ;;  %v825_v32 = vld [vmem:[%s3924_s2 + $0x398] sm:$0xff]  ;;  %v824_v54 = vld [vmem:[%s3924_s2 + $0x390] sm:$0xff] }
 0x321   :  { %1888 = vmatmul.mubr.msk.f32.gmra.mrb[10].mxu1 %vm3166_vm7, %v580_v7  ;;  %vm669_vm7 = vmand %vm661_vm1, %vm665_vm3  ;;  %v2324_v0 = vpack.c.bf16 %v805_v61, %v803_v59  ;;  %v2326_v6 = vpack.c.bf16 %v804_v2, %v802_v1  ;;  %v2328_v8 = vpack.c.bf16 %v809_v5, %v807_v3  ;;  %v2330_v14 = vpack.c.bf16 %v808_v10, %v806_v9  ;;  %v815_v7 = vld [vmem:[%s3924_s2 + $0x348] sm:$0xff]  ;;  %v814_v22 = vld [vmem:[%s3924_s2 + $0x340] sm:$0xff] }
 0x322   :  { %2303 = vmatpush1.bf16.msra.mxu1 %v2302_v63  ;;  %1889 = vmatprep.mubr.msk.f32.mxu1 %vm3172_vm8, %v615_v23  ;;  %v811_v63 = vld [vmem:[%s3924_s2 + $0x328] sm:$0xff]  ;;  %v2334_v19 = vpack.c.bf16 %v812_v16, %v810_v4  ;;  %v2336_v20 = vpack.c.bf16 %v817_v12, %v815_v7  ;;  %v816_v23 = vld [vmem:[%s3924_s2 + $0x350] sm:$0xff]  ;;  %v818_v29 = vld [vmem:[%s3924_s2 + $0x360] sm:$0xff]  ;;  %v647_v9 = vrot.slane %v3143_v60, 1  ;;  %v660_v16 = vadd.f32 1.0, %v3114_v38 }
 0x323   :  { %2305 = vmatprep.subr.bf16.mxu1 %v2304_v11  ;;  %v813_v11 = vld [vmem:[%s3924_s2 + $0x338] sm:$0xff]  ;;  %v2338_v27 = vpack.c.bf16 %v816_v23, %v814_v22  ;;  %v2342_v33 = vpack.c.bf16 %v820_v30, %v818_v29  ;;  %v828_v36 = vld [vmem:[%s3924_s2 + $0x3b0] sm:$0xff]  ;;  %v831_v46 = vld [vmem:[%s3924_s2 + $0x3c8] sm:$0xff]  ;;  %v649_v12 = vrot.slane %v3170_v13, 1  ;;  %vm655_vm0 = vcmask 1042432  }
 0x324   :  { %v2332_v15 = vpack.c.bf16 %v813_v11, %v811_v63  ;;  %v830_v41 = vld [vmem:[%s3924_s2 + $0x3c0] sm:$0xff]  ;;  %v832_v42 = vld [vmem:[%s3924_s2 + $0x3d0] sm:$0xff]  ;;  %v835_v44 = vld [vmem:[%s3924_s2 + $0x3e8] sm:$0xff]  ;;  %v648_v7 = vsel %vm643_vm6, %v645_v43, %v647_v9  ;;  %vm668_vm15 = vcmp.lt.f32.partialorder %v660_v16, 13.5 }
 0x325   :  { %1890 = vmatmul.mubr.msk.f32.gmra.mrb[12].mxu1 %vm604_vm13, %v582_v31  ;;  %v823_v31 = vld [vmem:[%s3924_s2 + $0x388] sm:$0xff]  ;;  %v837_v48 = vld [vmem:[%s3924_s2 + $0x3f8] sm:$0xff]  ;;  %v834_v57 = vld [vmem:[%s3924_s2 + $0x3e0] sm:$0xff] }
 0x326   :  { %2307 = vmatpush1.bf16.msra.mxu1 %v2306_v26  ;;  %1891 = vmatprep.mubr.msk.f32.mxu1 %vm3201_vm14, %v617_v49  ;;  %v821_v26 = vld [vmem:[%s3924_s2 + $0x378] sm:$0xff]  ;;  %v2344_v34 = vpack.c.bf16 %v825_v32, %v823_v31  ;;  %v822_v49 = vld [vmem:[%s3924_s2 + $0x380] sm:$0xff]  ;;  %v836_v58 = vld [vmem:[%s3924_s2 + $0x3f0] sm:$0xff]  ;;  %vm664_vm14 = vcmp.gt.f32.partialorder %v660_v16, -0.5 }
 0x327   :  { %2309 = vmatprep.subr.bf16.mxu1 %v2308_v28  ;;  %v2340_v28 = vpack.c.bf16 %v821_v26, %v819_v24  ;;  %v2346_v51 = vpack.c.bf16 %v824_v54, %v822_v49  ;;  %v839_v59 = vld [vmem:[%s3924_s2 + $0x408] sm:$0xff]  ;;  %v841_v61 = vld [vmem:[%s3924_s2 + $0x418] sm:$0xff]  ;;  %v838_v2 = vld [vmem:[%s3924_s2 + $0x400] sm:$0xff]  ;;  %v650_v26 = vsel %vm643_vm6, %v647_v9, %v649_v12  ;;  %vm677_vm6 = vcmask 1045504  }
 0x328   :  { %v2360_v1 = vpack.c.bf16 %v841_v61, %v839_v59  ;;  %v840_v3 = vld [vmem:[%s3924_s2 + $0x410] sm:$0xff]  ;;  %v843_v5 = vld [vmem:[%s3924_s2 + $0x428] sm:$0xff]  ;;  %v842_v11 = vld [vmem:[%s3924_s2 + $0x420] sm:$0xff] }
 0x329   :  { %1892 = vmatmul.mubr.msk.f32.gmra.mrb[14].mxu1 %vm605_vm4, %v584_v55  ;;  %v826_v55 = vld [vmem:[%s3924_s2 + $0x3a0] sm:$0xff]  ;;  %v2362_v10 = vpack.c.bf16 %v840_v3, %v838_v2  ;;  %v849_v4 = vld [vmem:[%s3924_s2 + $0x458] sm:$0xff]  ;;  %v848_v23 = vld [vmem:[%s3924_s2 + $0x450] sm:$0xff]  ;;  %v678_v2 = vrot.slane %v3116_v39, 2  ;;  %v679_v3 = vrot.slane %v3118_v40, 2 }
 0x32a   :  { %2311 = vmatpush1.bf16.msra.mxu1 %v2310_v37  ;;  %1893 = vmatprep.mubr.msk.f32.mxu1 %vm669_vm7, %v646_v53  ;;  %v827_v37 = vld [vmem:[%s3924_s2 + $0x3a8] sm:$0xff]  ;;  %v833_v53 = vld [vmem:[%s3924_s2 + $0x3d8] sm:$0xff]  ;;  %v846_v22 = vld [vmem:[%s3924_s2 + $0x440] sm:$0xff] }
 0x32b   :  { %2313 = vmatprep.subr.bf16.mxu1 %v2312_v45  ;;  %v829_v45 = vld [vmem:[%s3924_s2 + $0x3b8] sm:$0xff]  ;;  %v851_v43 = vld [vmem:[%s3924_s2 + $0x468] sm:$0xff]  ;;  %vm672_vm1 = vmand %vm664_vm14, %vm668_vm15 }
 0x32c   :  { %v2348_v52 = vpack.c.bf16 %v829_v45, %v827_v37  ;;  %v853_v24 = vld [vmem:[%s3924_s2 + $0x478] sm:$0xff]  ;;  %v850_v29 = vld [vmem:[%s3924_s2 + $0x460] sm:$0xff]  ;;  %v852_v30 = vld [vmem:[%s3924_s2 + $0x470] sm:$0xff] }
 0x32d   :  { %v855_v31 = vld [vmem:[%s3924_s2 + $0x488] sm:$0xff]  ;;  %v857_v32 = vld [vmem:[%s3924_s2 + $0x498] sm:$0xff]  ;;  %v854_v54 = vld [vmem:[%s3924_s2 + $0x480] sm:$0xff] }
 0x32e   :  { %2315 = vmatpush1.bf16.msra.mxu1 %v2314_v35  ;;  %v2350_v35 = vpack.c.bf16 %v828_v36, %v826_v55  ;;  %v2376_v49 = vpack.c.bf16 %v857_v32, %v855_v31  ;;  %v856_v37 = vld [vmem:[%s3924_s2 + $0x490] sm:$0xff]  ;;  %v859_v45 = vld [vmem:[%s3924_s2 + $0x4a8] sm:$0xff]  ;;  %v2590_v55 = vmov 0.0   ;;  %v866_v59 = vld [vmem:[%s3924_s2 + $0x4e0] sm:$0xff] }
 0x32f   :  { %2317 = vmatprep.subr.bf16.mxu1 %v2316_v25  ;;  %v2352_v25 = vpack.c.bf16 %v833_v53, %v831_v46  ;;  %v858_v46 = vld [vmem:[%s3924_s2 + $0x4a0] sm:$0xff]  ;;  %v860_v53 = vld [vmem:[%s3924_s2 + $0x4b0] sm:$0xff] }
 0x330   :  { %v868_v61 = vld [vmem:[%s3924_s2 + $0x4f0] sm:$0xff] }
 0x332   :  { %2319 = vmatpush1.bf16.msra.mxu1 %v2318_v50  ;;  %v2354_v50 = vpack.c.bf16 %v832_v42, %v830_v41  ;;  %v2382_v41 = vpack.c.bf16 %v860_v53, %v858_v46 }
 0x333   :  { %2321 = vmatprep.subr.bf16.mxu1 %v2320_v56  ;;  %v2356_v56 = vpack.c.bf16 %v837_v48, %v835_v44  ;;  %v862_v44 = vld [vmem:[%s3924_s2 + $0x4c0] sm:$0xff]  ;;  %v864_v48 = vld [vmem:[%s3924_s2 + $0x4d0] sm:$0xff] }
 0x336   :  { %2323 = vmatpush1.bf16.msra.mxu1 %v2322_v62  ;;  %v658_v62 = vadd.f32 1.0, %v3081_v21 }
 0x337   :  { %2325 = vmatprep.subr.bf16.mxu1 %v2324_v0  ;;  %v2358_v0 = vpack.c.bf16 %v836_v58, %v834_v57  ;;  %v2386_v57 = vpack.c.bf16 %v864_v48, %v862_v44 }
 0x338   :  { %vm662_vm8 = vcmp.gt.f32.partialorder %v658_v62, -0.5  ;;  %vm666_vm9 = vcmp.lt.f32.partialorder %v658_v62, 13.5  ;;  %v690_v62 = vadd.f32 2.0, %v3076_v17  ;;  %v680_v17 = vsel %vm677_vm6, %v678_v2, %v679_v3 }
 0x339   :  { %vm670_vm10 = vmand %vm662_vm8, %vm666_vm9 }
 0x33a   :  { %2327 = vmatpush1.bf16.msra.mxu1 %v2326_v6  ;;  %v845_v6 = vld [vmem:[%s3924_s2 + $0x438] sm:$0xff]  ;;  %vm694_vm3 = vcmp.gt.f32.partialorder %v690_v62, -0.5  ;;  %vm698_vm4 = vcmp.lt.f32.partialorder %v690_v62, 13.5 }
 0x33b   :  { %2329 = vmatprep.subr.bf16.mxu1 %v2328_v8  ;;  %v659_v8 = vadd.f32 1.0, %v3105_v47  ;;  %v2364_v63 = vpack.c.bf16 %v845_v6, %v843_v5  ;;  %vm702_vm7 = vmand %vm694_vm3, %vm698_vm4  ;;  %v692_v5 = vadd.f32 2.0, %v3105_v47  ;;  %v681_v6 = vrot.slane %v3143_v60, 2 }
 0x33c   :  { %vm2591_vm3 = vmmov 1  }
 0x33d   :  { %vm663_vm11 = vcmp.gt.f32.partialorder %v659_v8, -0.5  ;;  %vm667_vm12 = vcmp.lt.f32.partialorder %v659_v8, 13.5 }
 0x33e   :  { %2331 = vmatpush1.bf16.msra.mxu1 %v2330_v14  ;;  %v844_v14 = vld [vmem:[%s3924_s2 + $0x430] sm:$0xff]  ;;  %vm671_vm13 = vmand %vm663_vm11, %vm667_vm12  ;;  %vm696_vm11 = vcmp.gt.f32.partialorder %v692_v5, -0.5  ;;  %vm700_vm12 = vcmp.lt.f32.partialorder %v692_v5, 13.5 }
 0x33f   :  { %2333 = vmatprep.subr.bf16.mxu1 %v2332_v15  ;;  %v847_v15 = vld [vmem:[%s3924_s2 + $0x448] sm:$0xff] }
 0x342   :  { %2335 = vmatpush1.bf16.msra.mxu1 %v2334_v19  ;;  %v2366_v19 = vpack.c.bf16 %v844_v14, %v842_v11 }
 0x343   :  { %2337 = vmatprep.subr.bf16.mxu1 %v2336_v20  ;;  %v2368_v20 = vpack.c.bf16 %v849_v4, %v847_v15 }
 0x346   :  { %2339 = vmatpush1.bf16.msra.mxu1 %v2338_v27  ;;  %v2370_v27 = vpack.c.bf16 %v848_v23, %v846_v22 }
 0x347   :  { %2341 = vmatprep.subr.bf16.mxu1 %v2340_v28  ;;  %v2372_v28 = vpack.c.bf16 %v853_v24, %v851_v43 }
 0x34a   :  { %2343 = vmatpush1.bf16.msra.mxu1 %v2342_v33  ;;  %v656_v33 = vsel %vm655_vm0, %v649_v12, 0.0 }
 0x34b   :  { %2345 = vmatprep.subr.bf16.mxu1 %v2344_v34  ;;  %v2374_v34 = vpack.c.bf16 %v852_v30, %v850_v29 }
 0x34e   :  { %2347 = vmatpush1.bf16.msra.mxu1 %v2346_v51  ;;  %v861_v51 = vld [vmem:[%s3924_s2 + $0x4b8] sm:$0xff] }
 0x34f   :  { %2349 = vmatprep.subr.bf16.mxu1 %v2348_v52  ;;  %v2378_v52 = vpack.c.bf16 %v856_v37, %v854_v54  ;;  %v2380_v36 = vpack.c.bf16 %v861_v51, %v859_v45 }
 0x352   :  { %2351 = vmatpush1.bf16.msra.mxu1 %v2350_v35  ;;  %v863_v35 = vld [vmem:[%s3924_s2 + $0x4c8] sm:$0xff] }
 0x353   :  { %2353 = vmatprep.subr.bf16.mxu1 %v2352_v25  ;;  %v865_v25 = vld [vmem:[%s3924_s2 + $0x4d8] sm:$0xff] }
 0x354   :  { %v2384_v42 = vpack.c.bf16 %v865_v25, %v863_v35 }
 0x356   :  { %2355 = vmatpush1.bf16.msra.mxu1 %v2354_v50  ;;  %v867_v50 = vld [vmem:[%s3924_s2 + $0x4e8] sm:$0xff] }
 0x357   :  { %2357 = vmatprep.subr.bf16.mxu1 %v2356_v56  ;;  %v869_v56 = vld [vmem:[%s3924_s2 + $0x4f8] sm:$0xff] }
 0x358   :  { %v2388_v58 = vpack.c.bf16 %v869_v56, %v867_v50 }
 0x35a   :  { %2359 = vmatpush1.bf16.msra.mxu1 %v2358_v0  ;;  %v2390_v0 = vpack.c.bf16 %v868_v61, %v866_v59 }
 0x35b   :  { %2361 = vmatprep.subr.bf16.mxu1 %v2360_v1  ;;  %v691_v1 = vadd.f32 2.0, %v3081_v21  ;;  %v693_v21 = vadd.f32 2.0, %v3114_v38  ;;  %v1228_v38 = vld [vmem:[%s3926_s4] sm:$0xff] }
 0x35d   :  { %1024 = vmatmul.mubr.f32.vlgmr.msra.gmra.mrb[8].mxu1 %v3116_v39  ;;  %vm695_vm8 = vcmp.gt.f32.partialorder %v691_v1, -0.5  ;;  %vm699_vm9 = vcmp.lt.f32.partialorder %v691_v1, 13.5  ;;  %v682_v39 = vsel %vm677_vm6, %v679_v3, %v681_v6  ;;  %vm697_vm14 = vcmp.gt.f32.partialorder %v693_v21, -0.5 }
 0x35e   :  { %1894 = vmatprep.mubr.msk.f32.mxu1 %vm670_vm10, %v648_v7  ;;  %2363 = vmatpush1.bf16.msra.mxu1 %v2362_v10  ;;  %vm703_vm10 = vmand %vm695_vm8, %vm699_vm9  ;;  %vm701_vm15 = vcmp.lt.f32.partialorder %v693_v21, 13.5  ;;  %vm1850_vm8 = vcmask 254976  }
 0x35f   :  { %2365 = vmatprep.subr.bf16.mxu1 %v2364_v63  ;;  %vm705_vm0 = vmand %vm697_vm14, %vm701_vm15 }
 0x361   :  { %1030 = vmatmul.mubr.f32.gmra.mrb[10].mxu1 %v3118_v40  ;;  %v683_v40 = vrot.slane %v3170_v13, 2 }
 0x362   :  { %1895 = vmatprep.mubr.msk.f32.mxu1 %vm671_vm13, %v650_v26  ;;  %2367 = vmatpush1.bf16.msra.mxu1 %v2366_v19  ;;  %vm704_vm13 = vmand %vm696_vm11, %vm700_vm12 }
 0x363   :  { %2369 = vmatprep.subr.bf16.mxu1 %v2368_v20  ;;  %v684_v47 = vsel %vm677_vm6, %v681_v6, %v683_v40 }
 0x365   :  { %1036 = vmatmul.mubr.f32.gmra.mrb[12].mxu1 %v3143_v60  ;;  %v689_v60 = vsel %vm577_vm5, %v683_v40, 0.0  ;;  %vm1139_vm5 = vcmask 1043456  }
 0x366   :  { %1896 = vmatprep.mubr.msk.f32.mxu1 %vm672_vm1, %v656_v33  ;;  %2371 = vmatpush1.bf16.msra.mxu1 %v2370_v27  ;;  %vm1230_vm1 = vcmask 228352   ;;  %vm3501_vm4 = vmpackc.low %vm1139_vm5, %vm2591_vm3 }
 0x367   :  { %2373 = vmatprep.subr.bf16.mxu1 %v2372_v28  ;;  %2119 = vmatprep.mubr.msk.f32.mxu0 %vm1230_vm1, %v1228_v38 }
 0x369   :  { %1042 = vmatmul.mubr.f32.gmra.mrb[14].mxu1 %v3170_v13 }
 0x36a   :  { %2375 = vmatpush1.bf16.msra.mxu1 %v2374_v34  ;;  %1112 = vmatprep.mubr.f32.mxu1 %v2590_v55 }
 0x36b   :  { %2377 = vmatprep.subr.bf16.mxu1 %v2376_v49 }
 0x36e   :  { %2379 = vmatpush1.bf16.msra.mxu1 %v2378_v52 }
 0x36f   :  { %2381 = vmatprep.subr.bf16.mxu1 %v2380_v36 }
 0x372   :  { %2383 = vmatpush1.bf16.msra.mxu1 %v2382_v41 }
 0x373   :  { %2385 = vmatprep.subr.bf16.mxu1 %v2384_v42 }
 0x376   :  { %2387 = vmatpush1.bf16.msra.mxu1 %v2386_v57 }
 0x377   :  { %2389 = vmatprep.subr.bf16.mxu1 %v2388_v58  ;;  %v1229_v58 = vld [vmem:[%s3926_s4 + $0x8] sm:$0x3f] }
 0x37a   :  { %2391 = vmatpush1.bf16.msra.mxu1 %v2390_v0 }
 0x37d   :  { %1897 = vmatmul.mubr.msk.f32.vlgmr.msra.gmra.mrb[8].mxu1 %vm702_vm7, %v680_v17 }
 0x37e   :  { %1118 = vmatprep.mubr.f32.mxu1 %v2590_v55 }
 0x381   :  { %1898 = vmatmul.mubr.msk.f32.gmra.mrb[10].mxu1 %vm703_vm10, %v682_v39 }
 0x382   :  { %1124 = vmatprep.mubr.f32.mxu1 %v2590_v55 }
 0x385   :  { %1899 = vmatmul.mubr.msk.f32.gmra.mrb[12].mxu1 %vm704_vm13, %v684_v47 }
 0x386   :  { %1130 = vmatprep.mubr.f32.mxu1 %v2590_v55 }
 0x389   :  { %1900 = vmatmul.mubr.msk.f32.gmra.mrb[14].mxu1 %vm705_vm0, %v689_v60 }
 0x450   :  { %v1114_v13 = vpop.f32.mrb[8].mxu1 }
 0x451   :  { %v1116_v8 = vpop.f32.mrb[9].mxu1  ;;  %v1158_v63 = vmul.f32 %v1114_v13, %v1114_v13 }
 0x452   :  { %v1224_v9 = vmax.f32 %v1114_v13, %v1116_v8  ;;  %v1159_v4 = vmul.f32 %v1116_v8, %v1116_v8 }
 0x454   :  { %v1120_v10 = vpop.f32.mrb[10].mxu1 }
 0x455   :  { %v1137_v11 = vadd.f32 %v1120_v10, %v1114_v13  ;;  %v1160_v14 = vmul.f32 %v1120_v10, %v1120_v10  ;;  %v1122_v15 = vpop.f32.mrb[11].mxu1 }
 0x456   :  { %v1148_v16 = vadd.f32 %v1122_v15, %v1116_v8  ;;  %v1161_v7 = vmul.f32 %v1122_v15, %v1122_v15  ;;  %v1225_v12 = vmax.f32 %v1120_v10, %v1122_v15 }
 0x457   :  { %v1166_v19 = vadd.f32 %v1160_v14, %v1158_v63 }
 0x458   :  { %v1176_v20 = vadd.f32 %v1161_v7, %v1159_v4  ;;  %v2392_v22 = vpack.c.bf16 %v1225_v12, %v1224_v9  ;;  %v1126_v23 = vpop.f32.mrb[12].mxu1  ;;  %v1904_v4 = vld [vmem:[%s3926_s4 + $0x10] sm:$0xff] }
 0x459   :  { %v1138_v43 = vadd.f32 %v1137_v11, %v1126_v23  ;;  %v1162_v24 = vmul.f32 %v1126_v23, %v1126_v23  ;;  %v1128_v26 = vpop.f32.mrb[13].mxu1 }
 0x45a   :  { %v1149_v27 = vadd.f32 %v1148_v16, %v1128_v26  ;;  %v1163_v28 = vmul.f32 %v1128_v26, %v1128_v26  ;;  %v1226_v29 = vmax.f32 %v1126_v23, %v1128_v26  ;;  %2393 = vmatprep.subr.bf16.mxu0 %v2392_v22  ;;  %v1905_v16 = vld [vmem:[%s3926_s4 + $0x18] sm:$0x3f]  ;;  %v1475_v23 = vld [vmem:[%s3927_s5 + $0x88] sm:$0xff] }
 0x45b   :  { %v1167_v30 = vadd.f32 %v1166_v19, %v1162_v24  ;;  %2395 = vmatpush3.bf16.msra.mxu0 %v2392_v22 }
 0x45c   :  { %v1177_v31 = vadd.f32 %v1176_v20, %v1163_v28  ;;  %v1132_v32 = vpop.f32.mrb[14].mxu1 }
 0x45d   :  { %v1140_v33 = vsel %vm1139_vm5, %v1132_v32, 0.0  ;;  %v1164_v34 = vmul.f32 %v1132_v32, %v1132_v32  ;;  %v1134_v49 = vpop.f32.mrb[15].mxu1 }
 0x45e   :  { %v1141_v54 = vadd.f32 %v1140_v33, %v1138_v43  ;;  %v1150_v37 = vsel %vm1139_vm5, %v1134_v49, 0.0  ;;  %v1165_v45 = vmul.f32 %v1134_v49, %v1134_v49  ;;  %v1227_v51 = vmax.f32 %v1132_v32, %v1134_v49  ;;  %v1477_v49 = vld [vmem:[%s3927_s5 + $0x98] sm:$0xff] }
 0x45f   :  { %v1168_v52 = vsel %vm1139_vm5, %v1164_v34, 0.0  ;;  %v1151_v36 = vadd.f32 %v1150_v37, %v1149_v27  ;;  %v1476_v34 = vld [vmem:[%s3927_s5 + $0x90] sm:$0xff] }
 0x460   :  { %v1142_v53 = vrot.slane %v1141_v54, 4  ;;  %v1169_v35 = vadd.f32 %v1168_v52, %v1167_v30  ;;  %v1178_v25 = vsel %vm1139_vm5, %v1165_v45, 0.0  ;;  %v2396_v41 = vpack.c.bf16 %v1227_v51, %v1226_v29  ;;  %v1458_v29 = vld [vmem:[%s3927_s5] sm:$0xff]  ;;  %v1459_v30 = vld [vmem:[%s3927_s5 + $0x8] sm:$0xff]  ;;  %v1460_v37 = vld [vmem:[%s3927_s5 + $0x10] sm:$0xff] }
 0x461   :  { %v1152_v42 = vrot.slane %v1151_v36, 4  ;;  %v1179_v44 = vadd.f32 %v1178_v25, %v1177_v31  ;;  %v2414_v32 = vpack.c.bf16 %v1459_v30, %v1458_v29  ;;  %v1461_v45 = vld [vmem:[%s3927_s5 + $0x18] sm:$0xff]  ;;  %v1478_v25 = vld [vmem:[%s3927_s5 + $0xa0] sm:$0xff] }
 0x462   :  { %v1143_v48 = vadd.f32 %v1142_v53, %v1141_v54  ;;  %v1170_v50 = vrot.slane %v1169_v35, 4  ;;  %2398 = vmatprep.subr.msk.bf16.mxu0 %vm3501_vm4, %v2396_v41  ;;  %v2416_v54 = vpack.c.bf16 %v1477_v49, %v1476_v34  ;;  %v2418_v52 = vpack.c.bf16 %v1461_v45, %v1460_v37 }
 0x463   :  { %v1153_v56 = vadd.f32 %v1152_v42, %v1151_v36  ;;  %v1180_v57 = vrot.slane %v1179_v44, 4  ;;  %2401 = vmatpush3.bf16.msk.msra.mxu0 %vm3501_vm4, %v2396_v41 }
 0x464   :  { %v1144_v59 = vrot.slane %v1143_v48, 2  ;;  %v1171_v61 = vadd.f32 %v1170_v50, %v1169_v35  ;;  %2403 = vmatprep.subr.bf16.mxu0 %v2392_v22  ;;  %v1463_v50 = vld [vmem:[%s3927_s5 + $0x28] sm:$0xff] }
 0x465   :  { %v1154_v62 = vrot.slane %v1153_v56, 2  ;;  %v1181_v0 = vadd.f32 %v1180_v57, %v1179_v44 }
 0x466   :  { %2120 = vmatmul.mubr.msk.f32.vlgmr.msra.gmra.mrb[14].mxu0 %vm1230_vm1, %v1229_v58  ;;  %v1145_v1 = vadd.f32 %v1144_v59, %v1143_v48  ;;  %v1172_v2 = vrot.slane %v1171_v61, 2  ;;  %v1462_v48 = vld [vmem:[%s3927_s5 + $0x20] sm:$0xff]  ;;  %v1480_v59 = vld [vmem:[%s3927_s5 + $0xb0] sm:$0xff] }
 0x467   :  { %v1155_v3 = vadd.f32 %v1154_v62, %v1153_v56  ;;  %v1182_v5 = vrot.slane %v1181_v0, 2  ;;  %2405 = vmatpush3.bf16.msra.mxu0 %v2392_v22  ;;  %2130 = vmatprep.mubr.msk.f32.mxu0 %vm1230_vm1, %v1904_v4  ;;  %v1474_v22 = vld [vmem:[%s3927_s5 + $0x80] sm:$0xff]  ;;  %v2422_v57 = vpack.c.bf16 %v1463_v50, %v1462_v48 }
 0x468   :  { %2408 = vmatprep.subr.msk.bf16.mxu0 %vm3501_vm4, %v2396_v41  ;;  %v1146_v17 = vrot.slane %v1145_v1, 1  ;;  %v1173_v6 = vadd.f32 %v1172_v2, %v1171_v61  ;;  %v2412_v43 = vpack.c.bf16 %v1475_v23, %v1474_v22  ;;  %v1481_v61 = vld [vmem:[%s3927_s5 + $0xb8] sm:$0xff]  ;;  %v1506_v22 = vld [vmem:[%s3927_s5 + $0x180] sm:$0xff]  ;;  %v1507_v23 = vld [vmem:[%s3927_s5 + $0x188] sm:$0xff] }
 0x469   :  { %v1156_v21 = vrot.slane %v1155_v3, 1  ;;  %v1183_v39 = vadd.f32 %v1182_v5, %v1181_v0  ;;  %v2424_v62 = vpack.c.bf16 %v1481_v61, %v1480_v59  ;;  %v1464_v0 = vld [vmem:[%s3927_s5 + $0x30] sm:$0xff]  ;;  %v1483_v5 = vld [vmem:[%s3927_s5 + $0xc8] sm:$0xff] }
 0x46a   :  { %v1147_v40 = vadd.f32 %v1146_v17, %v1145_v1  ;;  %v1174_v47 = vrot.slane %v1173_v6, 1  ;;  %v1465_v1 = vld [vmem:[%s3927_s5 + $0x38] sm:$0xff] }
 0x46b   :  { %2411 = vmatpush3.bf16.msk.msra.mxu0 %vm3501_vm4, %v2396_v41  ;;  %v1157_v60 = vadd.f32 %v1156_v21, %v1155_v3  ;;  %v1184_v38 = vrot.slane %v1183_v39, 1  ;;  %v1479_v41 = vld [vmem:[%s3927_s5 + $0xa8] sm:$0xff]  ;;  %v2426_v2 = vpack.c.bf16 %v1465_v1, %v1464_v0  ;;  %v1482_v3 = vld [vmem:[%s3927_s5 + $0xc0] sm:$0xff] }
 0x46c   :  { %v1175_v13 = vadd.f32 %v1174_v47, %v1173_v6  ;;  %2413 = vmatprep.subr.bf16.mxu0 %v2412_v43  ;;  %v2420_v44 = vpack.c.bf16 %v1479_v41, %v1478_v25  ;;  %v2428_v17 = vpack.c.bf16 %v1483_v5, %v1482_v3  ;;  %v1466_v6 = vld [vmem:[%s3927_s5 + $0x40] sm:$0xff]  ;;  %v1467_v21 = vld [vmem:[%s3927_s5 + $0x48] sm:$0xff]  ;;  %v1485_v47 = vld [vmem:[%s3927_s5 + $0xd8] sm:$0xff]  ;;  %v2444_v43 = vpack.c.bf16 %v1507_v23, %v1506_v22 }
 0x46d   :  { %v1186_v8 = vadd.f32 %v1157_v60, %v1147_v40  ;;  %v1185_v9 = vadd.f32 %v1184_v38, %v1183_v39  ;;  %v2430_v39 = vpack.c.bf16 %v1467_v21, %v1466_v6  ;;  %v1484_v40 = vld [vmem:[%s3927_s5 + $0xd0] sm:$0xff]  ;;  %v1493_v5 = vld [vmem:[%s3927_s5 + $0x118] sm:$0xff] }
 0x46e   :  { %2131 = vmatmul.mubr.msk.f32.vlgmr.msra.gmra.mrb[16].mxu0 %vm1230_vm1, %v1905_v16  ;;  %v2432_v60 = vpack.c.bf16 %v1485_v47, %v1484_v40  ;;  %v1468_v38 = vld [vmem:[%s3927_s5 + $0x50] sm:$0xff]  ;;  %v1489_v16 = vld [vmem:[%s3927_s5 + $0xf8] sm:$0xff]  ;;  %v1511_v40 = vld [vmem:[%s3927_s5 + $0x1a8] sm:$0xff] }
 0x46f   :  { %1187 = vrot.lane.b32.xlu0 %v1186_v8, %s2586_s11  ;;  %v1202_v10 = vadd.f32 %v1185_v9, %v1175_v13  ;;  %2415 = vmatpush3.bf16.msra.mxu0 %v2414_v32  ;;  %v1469_v13 = vld [vmem:[%s3927_s5 + $0x58] sm:$0xff]  ;;  %v1486_v9 = vld [vmem:[%s3927_s5 + $0xe0] sm:$0xff]  ;;  %v1492_v3 = vld [vmem:[%s3927_s5 + $0x110] sm:$0xff] }
 0x470   :  { %2417 = vmatprep.subr.bf16.mxu0 %v2416_v54 }
 0x471   :  { %1203 = vrot.lane.b32.xlu1 %v1202_v10, %s2586_s11 }
 0x473   :  { %2419 = vmatpush3.bf16.msra.mxu0 %v2418_v52 }
 0x474   :  { %2421 = vmatprep.subr.bf16.mxu0 %v2420_v44  ;;  %v1491_v44 = vld [vmem:[%s3927_s5 + $0x108] sm:$0xff] }
 0x477   :  { %2423 = vmatpush3.bf16.msra.mxu0 %v2422_v57 }
 0x478   :  { %2425 = vmatprep.subr.bf16.mxu0 %v2424_v62 }
 0x47b   :  { %2427 = vmatpush3.bf16.msra.mxu0 %v2426_v2 }
 0x47c   :  { %2429 = vmatprep.subr.bf16.mxu0 %v2428_v17 }
 0x47f   :  { %2431 = vmatpush3.bf16.msra.mxu0 %v2430_v39  ;;  %v1510_v39 = vld [vmem:[%s3927_s5 + $0x1a0] sm:$0xff] }
 0x480   :  { %2433 = vmatprep.subr.bf16.mxu0 %v2432_v60 }
 0x4e1   :  { %v1188_v63 = vpop.permute.xlu0 %1187 }
 0x4e2   :  { %v1189_v11 = vadd.f32 %v1188_v63, %v1186_v8  ;;  %v2434_v8 = vpack.c.bf16 %v1469_v13, %v1468_v38 }
 0x4e3   :  { %v1204_v14 = vpop.permute.xlu1 %1203 }
 0x4e4   :  { %v1205_v15 = vadd.f32 %v1204_v14, %v1202_v10  ;;  %1190 = vrot.lane.b32.xlu0 %v1189_v11, %s2587_s21  ;;  %2435 = vmatpush3.bf16.msra.mxu0 %v2434_v8  ;;  %v1487_v10 = vld [vmem:[%s3927_s5 + $0xe8] sm:$0xff]  ;;  %v2450_v8 = vpack.c.bf16 %v1493_v5, %v1492_v3  ;;  %v1544_v5 = vld [vmem:[%s3927_s5 + $0x2b0] sm:$0xff] }
 0x4e5   :  { %v2436_v63 = vpack.c.bf16 %v1487_v10, %v1486_v9  ;;  %v1471_v14 = vld [vmem:[%s3927_s5 + $0x68] sm:$0xff]  ;;  %v2452_v10 = vpack.c.bf16 %v1511_v40, %v1510_v39  ;;  %v1528_v39 = vld [vmem:[%s3927_s5 + $0x230] sm:$0xff]  ;;  %v1529_v40 = vld [vmem:[%s3927_s5 + $0x238] sm:$0xff] }
 0x4e6   :  { %1206 = vrot.lane.b32.xlu1 %v1205_v15, %s2587_s21  ;;  %v1527_v3 = vld [vmem:[%s3927_s5 + $0x228] sm:$0xff] }
 0x4e7   :  { %2437 = vmatprep.subr.bf16.mxu0 %v2436_v63  ;;  %v1494_v63 = vld [vmem:[%s3927_s5 + $0x120] sm:$0xff] }
 0x539   :  { %v3546_v31 = vpop.f32.mrb[14].mxu0 }
 0x53a   :  { %v3548_v33 = vpop.f32.mrb[15].mxu0 }
 0x541   :  { %v3562_v51 = vpop.f32.mrb[16].mxu0 }
 0x542   :  { %v3564_v36 = vpop.f32.mrb[17].mxu0  ;;  %v1400_v53 = vmax.f32 %v3546_v31, %v3562_v51  ;;  %v1508_v31 = vld [vmem:[%s3927_s5 + $0x190] sm:$0xff] }
 0x543   :  { %v1399_v35 = vmax.f32 %v3548_v33, %v3564_v36 }
 0x556   :  { %v1191_v7 = vpop.permute.xlu0 %1190 }
 0x557   :  { %v1192_v12 = vadd.f32 %v1191_v7, %v1189_v11  ;;  %v1470_v11 = vld [vmem:[%s3927_s5 + $0x60] sm:$0xff]  ;;  %v1472_v7 = vld [vmem:[%s3927_s5 + $0x70] sm:$0xff] }
 0x558   :  { %v1207_v19 = vpop.permute.xlu1 %1206  ;;  %v2438_v4 = vpack.c.bf16 %v1471_v14, %v1470_v11  ;;  %v1495_v11 = vld [vmem:[%s3927_s5 + $0x128] sm:$0xff]  ;;  %v1512_v14 = vld [vmem:[%s3927_s5 + $0x1b0] sm:$0xff] }
 0x559   :  { %v1208_v20 = vadd.f32 %v1207_v19, %v1205_v15  ;;  %1193 = vrot.lane.b32.xlu0 %v1192_v12, %s2588_s27  ;;  %v1488_v15 = vld [vmem:[%s3927_s5 + $0xf0] sm:$0xff] }
 0x55a   :  { %v2440_v19 = vpack.c.bf16 %v1489_v16, %v1488_v15  ;;  %2439 = vmatpush3.bf16.msra.mxu0 %v2438_v4  ;;  %v1513_v15 = vld [vmem:[%s3927_s5 + $0x1b8] sm:$0xff]  ;;  %v2454_v4 = vpack.c.bf16 %v1495_v11, %v1494_v63  ;;  %v1531_v63 = vld [vmem:[%s3927_s5 + $0x248] sm:$0xff]  ;;  %v1548_v11 = vld [vmem:[%s3927_s5 + $0x2d0] sm:$0xff] }
 0x55b   :  { %1209 = vrot.lane.b32.xlu1 %v1208_v20, %s2588_s27  ;;  %v2456_v16 = vpack.c.bf16 %v1513_v15, %v1512_v14  ;;  %v1549_v14 = vld [vmem:[%s3927_s5 + $0x2d8] sm:$0xff] }
 0x55c   :  { %2441 = vmatprep.subr.bf16.mxu0 %v2440_v19  ;;  %v1514_v19 = vld [vmem:[%s3927_s5 + $0x1c0] sm:$0xff] }
 0x5cb   :  { %v1194_v24 = vpop.permute.xlu0 %1193 }
 0x5cc   :  { %v1195_v26 = vadd.f32 %v1194_v24, %v1192_v12  ;;  %v1473_v12 = vld [vmem:[%s3927_s5 + $0x78] sm:$0xff] }
 0x5cd   :  { %v1210_v27 = vpop.permute.xlu1 %1209 }
 0x5ce   :  { %v1211_v28 = vadd.f32 %v1210_v27, %v1208_v20  ;;  %1196 = vrot.lane.b32.xlu0 %v1195_v26, %s2589_s23  ;;  %v2442_v20 = vpack.c.bf16 %v1473_v12, %v1472_v7  ;;  %v1496_v7 = vld [vmem:[%s3927_s5 + $0x130] sm:$0xff]  ;;  %v1497_v12 = vld [vmem:[%s3927_s5 + $0x138] sm:$0xff] }
 0x5cf   :  { %v2458_v22 = vpack.c.bf16 %v1497_v12, %v1496_v7  ;;  %v1533_v7 = vld [vmem:[%s3927_s5 + $0x258] sm:$0xff]  ;;  %v1550_v12 = vld [vmem:[%s3927_s5 + $0x2e0] sm:$0xff] }
 0x5d0   :  { %1212 = vrot.lane.b32.xlu1 %v1211_v28, %s2589_s23  ;;  %2443 = vmatpush3.bf16.msra.mxu0 %v2442_v20  ;;  %v1515_v20 = vld [vmem:[%s3927_s5 + $0x1c8] sm:$0xff] }
 0x5d1   :  { %2445 = vmatprep.subr.bf16.mxu0 %v2444_v43  ;;  %v2460_v23 = vpack.c.bf16 %v1515_v20, %v1514_v19  ;;  %v1498_v43 = vld [vmem:[%s3927_s5 + $0x140] sm:$0xff]  ;;  %v1551_v19 = vld [vmem:[%s3927_s5 + $0x2e8] sm:$0xff] }
 0x640   :  { %v1197_v46 = vpop.permute.xlu0 %1196 }
 0x641   :  { %v1198_v42 = vadd.f32 %v1197_v46, %v1195_v26 }
 0x642   :  { %v1213_v56 = vpop.permute.xlu1 %1212 }
 0x643   :  { %v1214_v58 = vadd.f32 %v1213_v56, %v1211_v28  ;;  %1199 = vrot.lane.b32.xlu0 %v1198_v42, %s2592_s18 }
 0x645   :  { %1215 = vrot.lane.b32.xlu1 %v1214_v58, %s2592_s18 }
 0x6b5   :  { %v1200_v24 = vpop.permute.xlu0 %1199 }
 0x6b6   :  { %v1201_v26 = vadd.f32 %v1200_v24, %v1198_v42  ;;  %v1490_v42 = vld [vmem:[%s3927_s5 + $0x100] sm:$0xff]  ;;  %v1499_v24 = vld [vmem:[%s3927_s5 + $0x148] sm:$0xff] }
 0x6b7   :  { %v1216_v27 = vpop.permute.xlu1 %1215 }
 0x6b8   :  { %v1218_v28 = vmul.f32 0.0025510204, %v1201_v26  ;;  %v1217_v29 = vadd.f32 %v1216_v27, %v1214_v58  ;;  %v1516_v26 = vld [vmem:[%s3927_s5 + $0x1d0] sm:$0xff]  ;;  %v1517_v27 = vld [vmem:[%s3927_s5 + $0x1d8] sm:$0xff] }
 0x6ba   :  { %v1220_v30 = vmul.f32 %v1218_v28, %v1218_v28  ;;  %v1219_v32 = vmul.f32 0.0025510204, %v1217_v29  ;;  %v1404_v54 = vrot.slane %v1218_v28, %v3078_v18  ;;  %v2462_v28 = vpack.c.bf16 %v1499_v24, %v1498_v43  ;;  %v1535_v43 = vld [vmem:[%s3927_s5 + $0x268] sm:$0xff]  ;;  %v1552_v24 = vld [vmem:[%s3927_s5 + $0x2f0] sm:$0xff] }
 0x6bb   :  { %v2464_v29 = vpack.c.bf16 %v1517_v27, %v1516_v26  ;;  %v1553_v26 = vld [vmem:[%s3927_s5 + $0x2f8] sm:$0xff] }
 0x6bc   :  { %v1221_v34 = vsub.f32 %v1219_v32, %v1220_v30  ;;  %v1406_v45 = vsub.f32 %v1400_v53, %v1404_v54  ;;  %v1405_v46 = vsub.f32 %v1399_v35, %v1404_v54  ;;  %v2446_v35 = vpack.c.bf16 %v1491_v44, %v1490_v42  ;;  %v1500_v30 = vld [vmem:[%s3927_s5 + $0x150] sm:$0xff]  ;;  %v1501_v32 = vld [vmem:[%s3927_s5 + $0x158] sm:$0xff] }
 0x6bd   :  { %v2466_v54 = vpack.c.bf16 %v1501_v32, %v1500_v30  ;;  %v1504_v44 = vld [vmem:[%s3927_s5 + $0x170] sm:$0xff]  ;;  %v1537_v30 = vld [vmem:[%s3927_s5 + $0x278] sm:$0xff] }
 0x6be   :  { %v1222_v49 = vadd.f32 0.0001, %v1221_v34  ;;  %v1518_v34 = vld [vmem:[%s3927_s5 + $0x1e0] sm:$0xff] }
 0x6c0   :  { %2560 = vrsqrt.f32 %v1222_v49  ;;  %v1519_v49 = vld [vmem:[%s3927_s5 + $0x1e8] sm:$0xff] }
 0x6ca   :  { %v2561_v37 = vpop.eup %2560 }
 0x6cb   :  { %v1410_v52 = vrot.slane %v2561_v37, %v3078_v18  ;;  %v1509_v18 = vld [vmem:[%s3927_s5 + $0x198] sm:$0xff]  ;;  %v2468_v37 = vpack.c.bf16 %v1519_v49, %v1518_v34  ;;  %v1554_v34 = vld [vmem:[%s3927_s5 + $0x300] sm:$0xff]  ;;  %v1555_v49 = vld [vmem:[%s3927_s5 + $0x308] sm:$0xff] }
 0x6cc   :  { %v2448_v48 = vpack.c.bf16 %v1509_v18, %v1508_v31  ;;  %v1505_v31 = vld [vmem:[%s3927_s5 + $0x178] sm:$0xff]  ;;  %v1538_v18 = vld [vmem:[%s3927_s5 + $0x280] sm:$0xff] }
 0x6cd   :  { %v1412_v25 = vmul.f32 %v1410_v52, %v1406_v45  ;;  %v1411_v41 = vmul.f32 %v1410_v52, %v1405_v46  ;;  %v1502_v45 = vld [vmem:[%s3927_s5 + $0x160] sm:$0xff]  ;;  %v1503_v52 = vld [vmem:[%s3927_s5 + $0x168] sm:$0xff]  ;;  %v1520_v46 = vld [vmem:[%s3927_s5 + $0x1f0] sm:$0xff] }
 0x6cf   :  { %vm1414_vm6 = vcmp.gt.f32.partialorder %v1412_v25, 0.0  ;;  %v1416_v33 = vmul.f32 0.01, %v1412_v25  ;;  %vm1413_vm7 = vcmp.gt.f32.partialorder %v1411_v41, 0.0  ;;  %v1415_v51 = vmul.f32 0.01, %v1411_v41 }
 0x6d1   :  { %v1418_v36 = vsel %vm1414_vm6, %v1412_v25, %v1416_v33  ;;  %v1417_v53 = vsel %vm1413_vm7, %v1411_v41, %v1415_v51  ;;  %v1521_v25 = vld [vmem:[%s3927_s5 + $0x1f8] sm:$0xff]  ;;  %v2470_v41 = vpack.c.bf16 %v1503_v52, %v1502_v45  ;;  %v1539_v33 = vld [vmem:[%s3927_s5 + $0x288] sm:$0xff]  ;;  %v2474_v51 = vpack.c.bf16 %v1505_v31, %v1504_v44  ;;  %v1556_v45 = vld [vmem:[%s3927_s5 + $0x310] sm:$0xff] }
 0x6d2   :  { %v1420_v50 = vrot.slane %v1417_v53, 1  ;;  %v1909_v56 = vrot.slane %v1418_v36, 7  ;;  %v1430_v57 = vrot.slane %v1417_v53, 6  ;;  %v1424_v58 = vrot.slane %v1417_v53, 3  ;;  %v1557_v52 = vld [vmem:[%s3927_s5 + $0x318] sm:$0xff]  ;;  %v1562_v31 = vld [vmem:[%s3927_s5 + $0x340] sm:$0xff] }
 0x6d3   :  { %v1911_v59 = vrot.slane %v1418_v36, 9  ;;  %v1422_v61 = vrot.slane %v1417_v53, 2  ;;  %v1428_v62 = vrot.slane %v1417_v53, 5  ;;  %v1913_v0 = vrot.slane %v1418_v36, 11 }
 0x6d4   :  { %v1452_v1 = vsel %vm610_vm2, %v1420_v50, %v1909_v56  ;;  %v1451_v2 = vsel %vm610_vm2, %v1417_v53, %v1430_v57  ;;  %v1426_v17 = vrot.slane %v1417_v53, 4  ;;  %v1912_v6 = vrot.slane %v1418_v36, 10  ;;  %v1522_v53 = vld [vmem:[%s3927_s5 + $0x200] sm:$0xff]  ;;  %v1541_v50 = vld [vmem:[%s3927_s5 + $0x298] sm:$0xff] }
 0x6d5   :  { %1634 = vmatprep.mubr.f32.mxu0 %v1452_v1  ;;  %v1454_v21 = vsel %vm610_vm2, %v1424_v58, %v1911_v59  ;;  %v3684_v47 = vsel %vm610_vm2, %v1422_v61, %v1418_v36  ;;  %v3687_v60 = vsel %vm610_vm2, %v1428_v62, %v1913_v0  ;;  %v1914_v38 = vrot.slane %v1418_v36, 12  ;;  %v1524_v58 = vld [vmem:[%s3927_s5 + $0x210] sm:$0xff]  ;;  %v1525_v59 = vld [vmem:[%s3927_s5 + $0x218] sm:$0xff]  ;;  %v1542_v61 = vld [vmem:[%s3927_s5 + $0x2a0] sm:$0xff] }
 0x6d6   :  { %1635 = vmatmul.mubr.f32.vlgmr.msra.gmra.mrb[18].mxu0 %v1451_v2  ;;  %v3690_v13 = vsel %vm610_vm2, %v1426_v17, %v1912_v6  ;;  %v2472_v42 = vpack.c.bf16 %v1521_v25, %v1520_v46  ;;  %v2476_v36 = vpack.c.bf16 %v1539_v33, %v1538_v18  ;;  %v1543_v62 = vld [vmem:[%s3927_s5 + $0x2a8] sm:$0xff]  ;;  %v2482_v0 = vpack.c.bf16 %v1525_v59, %v1524_v58  ;;  %v1526_v2 = vld [vmem:[%s3927_s5 + $0x220] sm:$0xff]  ;;  %v1545_v17 = vld [vmem:[%s3927_s5 + $0x2b8] sm:$0xff] }
 0x6d7   :  { %2447 = vmatpush3.bf16.msra.mxu0 %v2446_v35  ;;  %1704 = vmatprep.mubr.f32.mxu0 %v1454_v21  ;;  %v3693_v9 = vsel %vm610_vm2, %v1430_v57, %v1914_v38  ;;  %v1523_v35 = vld [vmem:[%s3927_s5 + $0x208] sm:$0xff]  ;;  %v2484_v1 = vpack.c.bf16 %v1543_v62, %v1542_v61  ;;  %v2486_v6 = vpack.c.bf16 %v1527_v3, %v1526_v2  ;;  %vm2594_vm2 = vmmov 0   ;;  %v1558_v25 = vld [vmem:[%s3927_s5 + $0x320] sm:$0xff] }
 0x6d8   :  { %2449 = vmatprep.subr.bf16.mxu0 %v2448_v48  ;;  %v1540_v48 = vld [vmem:[%s3927_s5 + $0x290] sm:$0xff]  ;;  %v2478_v56 = vpack.c.bf16 %v1523_v35, %v1522_v53  ;;  %v2488_v21 = vpack.c.bf16 %v1545_v17, %v1544_v5  ;;  %v2490_v38 = vpack.c.bf16 %v1529_v40, %v1528_v39  ;;  %v2512_v46 = vpack.c.bf16 %v1557_v52, %v1556_v45  ;;  %v1563_v18 = vld [vmem:[%s3927_s5 + $0x348] sm:$0xff]  ;;  %v1566_v35 = vld [vmem:[%s3927_s5 + $0x360] sm:$0xff] }
 0x6d9   :  { %v2480_v57 = vpack.c.bf16 %v1541_v50, %v1540_v48  ;;  %v2521_v33 = vpack.c.bf16 %v1563_v18, %v1562_v31  ;;  %v1567_v48 = vld [vmem:[%s3927_s5 + $0x368] sm:$0xff] }
 0x6da   :  { %v2527_v50 = vpack.c.bf16 %v1567_v48, %v1566_v35 }
 0x6db   :  { %2451 = vmatpush3.bf16.msra.mxu0 %v2450_v8 }
 0x6dc   :  { %2453 = vmatprep.subr.bf16.mxu0 %v2452_v10  ;;  %v1530_v10 = vld [vmem:[%s3927_s5 + $0x240] sm:$0xff] }
 0x6dd   :  { %v2494_v15 = vpack.c.bf16 %v1531_v63, %v1530_v10 }
 0x6df   :  { %2455 = vmatpush3.bf16.msra.mxu0 %v2454_v4  ;;  %v2496_v4 = vpack.c.bf16 %v1549_v14, %v1548_v11 }
 0x6e0   :  { %2457 = vmatprep.subr.bf16.mxu0 %v2456_v16  ;;  %v1532_v16 = vld [vmem:[%s3927_s5 + $0x250] sm:$0xff] }
 0x6e1   :  { %v2498_v20 = vpack.c.bf16 %v1533_v7, %v1532_v16 }
 0x6e3   :  { %2459 = vmatpush3.bf16.msra.mxu0 %v2458_v22  ;;  %v2500_v22 = vpack.c.bf16 %v1551_v19, %v1550_v12 }
 0x6e4   :  { %2461 = vmatprep.subr.bf16.mxu0 %v2460_v23  ;;  %v1534_v23 = vld [vmem:[%s3927_s5 + $0x260] sm:$0xff] }
 0x6e5   :  { %v2502_v27 = vpack.c.bf16 %v1535_v43, %v1534_v23 }
 0x6e7   :  { %2463 = vmatpush3.bf16.msra.mxu0 %v2462_v28  ;;  %v2504_v28 = vpack.c.bf16 %v1553_v26, %v1552_v24 }
 0x6e8   :  { %2465 = vmatprep.subr.bf16.mxu0 %v2464_v29  ;;  %v1536_v29 = vld [vmem:[%s3927_s5 + $0x270] sm:$0xff] }
 0x6e9   :  { %v2506_v32 = vpack.c.bf16 %v1537_v30, %v1536_v29 }
 0x6eb   :  { %2467 = vmatpush3.bf16.msra.mxu0 %v2466_v54  ;;  %v2509_v54 = vpack.c.bf16 %v1555_v49, %v1554_v34 }
 0x6ec   :  { %2469 = vmatprep.subr.bf16.mxu0 %v2468_v37  ;;  %v2593_v37 = vmov 0.0|0.0  }
 0x6ef   :  { %2471 = vmatpush3.bf16.msra.mxu0 %v2470_v41  ;;  %v1559_v41 = vld [vmem:[%s3927_s5 + $0x328] sm:$0xff] }
 0x6f0   :  { %2473 = vmatprep.subr.bf16.mxu0 %v2472_v42  ;;  %v2515_v42 = vpack.c.bf16 %v1559_v41, %v1558_v25 }
 0x6f3   :  { %2475 = vmatpush3.bf16.msra.mxu0 %v2474_v51  ;;  %v1564_v51 = vld [vmem:[%s3927_s5 + $0x350] sm:$0xff] }
 0x6f4   :  { %2477 = vmatprep.subr.bf16.mxu0 %v2476_v36  ;;  %v1565_v36 = vld [vmem:[%s3927_s5 + $0x358] sm:$0xff] }
 0x6f5   :  { %v2524_v53 = vpack.c.bf16 %v1565_v36, %v1564_v51 }
 0x6f6   :  { %1705 = vmatmul.mubr.f32.vlgmr.msra.gmra.mrb[20].mxu0 %v3684_v47  ;;  %v1546_v47 = vld [vmem:[%s3927_s5 + $0x2c0] sm:$0xff] }
 0x6f7   :  { %2479 = vmatpush3.bf16.msra.mxu0 %v2478_v56  ;;  %1774 = vmatprep.mubr.f32.mxu0 %v3687_v60  ;;  %v1547_v60 = vld [vmem:[%s3927_s5 + $0x2c8] sm:$0xff]  ;;  %v1568_v56 = vld [vmem:[%s3927_s5 + $0x370] sm:$0xff] }
 0x6f8   :  { %2481 = vmatprep.subr.bf16.mxu0 %v2480_v57  ;;  %v2492_v8 = vpack.c.bf16 %v1547_v60, %v1546_v47  ;;  %v1569_v57 = vld [vmem:[%s3927_s5 + $0x378] sm:$0xff] }
 0x6f9   :  { %v2530_v58 = vpack.c.bf16 %v1569_v57, %v1568_v56 }
 0x6fb   :  { %2483 = vmatpush3.bf16.msra.mxu0 %v2482_v0 }
 0x6fc   :  { %2485 = vmatprep.subr.bf16.mxu0 %v2484_v1 }
 0x6ff   :  { %2487 = vmatpush3.bf16.msra.mxu0 %v2486_v6 }
 0x700   :  { %2489 = vmatprep.subr.bf16.mxu0 %v2488_v21 }
 0x703   :  { %2491 = vmatpush3.bf16.msra.mxu0 %v2490_v38 }
 0x704   :  { %2493 = vmatprep.subr.bf16.mxu0 %v2492_v8 }
 0x707   :  { %2495 = vmatpush3.bf16.msra.mxu0 %v2494_v15 }
 0x708   :  { %2497 = vmatprep.subr.bf16.mxu0 %v2496_v4 }
 0x70b   :  { %2499 = vmatpush3.bf16.msra.mxu0 %v2498_v20 }
 0x70c   :  { %2501 = vmatprep.subr.bf16.mxu0 %v2500_v22 }
 0x70f   :  { %2503 = vmatpush3.bf16.msra.mxu0 %v2502_v27 }
 0x710   :  { %2505 = vmatprep.subr.bf16.mxu0 %v2504_v28 }
 0x713   :  { %2507 = vmatpush3.bf16.msra.mxu0 %v2506_v32 }
 0x714   :  { %2508 = vmatprep.subr.bf16.mxu0 %v2593_v37 }
 0x716   :  { %1775 = vmatmul.mubr.f32.vlgmr.msra.gmra.mrb[22].mxu0 %v3690_v13  ;;  %v1560_v13 = vld [vmem:[%s3927_s5 + $0x330] sm:$0xff] }
 0x717   :  { %2510 = vmatpush3.bf16.msra.mxu0 %v2509_v54  ;;  %2165 = vmatprep.mubr.msk.f32.mxu0 %vm2594_vm2, %v2590_v55  ;;  %v1561_v55 = vld [vmem:[%s3927_s5 + $0x338] sm:$0xff]  ;;  %s2562_s5 = scalar_lea.vmem %s1859_s17, 32 }
 0x718   :  { %2511 = vmatprep.subr.bf16.mxu0 %v2593_v37  ;;  %v2518_v44 = vpack.c.bf16 %v1561_v55, %v1560_v13  ;;  %p2563_p0 = scmp.ne.s32.totalorder %s1859_s17, %s2562_s5  ;;  %p2568_p2 = scmp.lt.s32.totalorder %s2562_s5, %s2562_s5 }
 0x71a   :  { %p2569_p3 = por %p2568_p2, %p2567_p1 }
 0x71b   :  { %2513 = vmatpush3.bf16.msra.mxu0 %v2512_v46 }
 0x71c   :  { %2514 = vmatprep.subr.bf16.mxu0 %v2593_v37  ;;  %p2570_p4 = pnand %p2569_p3, %p2563_p0 }
 0x71f   :  { %2516 = vmatpush3.bf16.msra.mxu0 %v2515_v42 }
 0x720   :  { %2517 = vmatprep.subr.bf16.mxu0 %v2593_v37 }
 0x723   :  { %2519 = vmatpush3.bf16.msra.mxu0 %v2518_v44 }
 0x724   :  { %2520 = vmatprep.subr.bf16.mxu0 %v2593_v37 }
 0x727   :  { %2522 = vmatpush3.bf16.msra.mxu0 %v2521_v33 }
 0x728   :  { %2523 = vmatprep.subr.bf16.mxu0 %v2593_v37 }
 0x72b   :  { %2525 = vmatpush3.bf16.msra.mxu0 %v2524_v53 }
 0x72c   :  { %2526 = vmatprep.subr.bf16.mxu0 %v2593_v37 }
 0x72f   :  { %2528 = vmatpush3.bf16.msra.mxu0 %v2527_v50 }
 0x730   :  { %2529 = vmatprep.subr.bf16.mxu0 %v2593_v37 }
 0x733   :  { %2531 = vmatpush3.bf16.msra.mxu0 %v2530_v58 }
 0x736   :  { %2166 = vmatmul.mubr.f32.vlgmr.msra.gmra.mrb[24].mxu0 %v3693_v9 }
 0x7a9   :  { %v1981_v59 = vpop.f32.mrb[18].mxu0 }
 0x7aa   :  { %v1982_v61 = vpop.f32.mrb[19].mxu0 }
 0x7ab   :  { %v1983_v62 = vadd.f32 %v1982_v61, %v1981_v59 }
 0x7c9   :  { %v2016_v0 = vpop.f32.mrb[20].mxu0 }
 0x7ca   :  { %v2017_v1 = vpop.f32.mrb[21].mxu0 }
 0x7cb   :  { %v2018_v2 = vadd.f32 %v2017_v1, %v2016_v0 }
 0x7cd   :  { %v1707_v3 = vadd.f32 %v2018_v2, %v1983_v62 }
 0x7e9   :  { %v2051_v5 = vpop.f32.mrb[22].mxu0 }
 0x7ea   :  { %v2052_v17 = vpop.f32.mrb[23].mxu0 }
 0x7eb   :  { %v2053_v6 = vadd.f32 %v2052_v17, %v2051_v5 }
 0x7ed   :  { %v1777_v21 = vadd.f32 %v2053_v6, %v1707_v3 }
 0x809   :  { %v1846_v39 = vpop.f32.mrb[24].mxu0 }
 0x80a   :  { %v1847_v40 = vadd.f32 %v1846_v39, %v1777_v21  ;;  %v2167_v47 = vpop.f32.mrb[25].mxu0 }
 0x80c   :  { %1851 = vst.msk [vmem:[#allocation2] sm:$0x3] %vm1850_vm8, %v1847_v40 }
 0x80d   :  { %2573 = shalt.err (!%p2570_p4)
}
 0x80e   :  { %s2574_s20 = scalar_lea.hbm %s3928_s6, 32 }
 0x80f   :  { %p2575_p5 = scmp.ne.s32.totalorder %s3928_s6, %s2574_s20  ;;  %p2578_p6 = scmp.lt.u32.totalorder %s2574_s20, %s3928_s6 }
 0x811   :  { %p2580_p7 = pnand %p2578_p6, %p2575_p5 }
 0x813   :  { %2583 = shalt.err (!%p2580_p7)
}
 0x814   :  { %1861 = dma.vmem_to_hbm [thread:$0]  %s1859_s17, 32, %s3928_s6, [#allocation3]  }
 0x815   :  { %2584 = dma.done.wait [#allocation3], 32  }
 0x816   :  { %2585 = vsyncadd [#allocation3], 4294967264 }
 0x817   :  { %1865 = vsyncpa [#allocation3], 1 }

</bundles_post_ra>
